<compile_context>
chip_gen: v7x
topology: tpu7x:2x2x1
jax: 0.10.0
libtpu: 0.0.40
codegen_flags: <defaults>
</compile_context>

<pallas_src>
import jax
import jax.numpy as jnp
import numpy as np
from jax import lax
from jax.experimental import pallas as pl
from jax.experimental.pallas import tpu as pltpu

KSIZE = 7
PAD = 3          # 'same' padding for kernel_size=7
CK = 8           # channels per reduction chunk (one full sublane group)


def _round_up(x, m):
    return ((x + m - 1) // m) * m


def _make_kernel(Nb, C, W, HWp):
    inv_c = 1.0 / C
    n_chunks = C // CK
    rem = C - n_chunks * CK

    def kernel(w_ref, mh_ref, mw_ref, x_ref, o_ref, avg_sc, max_sc):
        # w_ref : SMEM (2*49,) f32          conv weights, channel-major
        # mh_ref: VMEM (7, HWp) f32         row-validity mask per kh
        # mw_ref: VMEM (7, HWp) f32         col-validity mask per kw
        # x_ref : VMEM (Nb, C, HWp)         flattened spatial, lane-dense
        # o_ref : VMEM (Nb, 1, HWp)         flattened output, lane-dense rows
        # avg_sc/max_sc: VMEM (Nb, HWp) f32 assembled reduced planes

        # ---- fused single-pass channel reduction (sum + max in one sweep) ----
        for b in range(Nb):
            s_tot = None
            m_tot = None
            if n_chunks == 1:
                slab = x_ref[b, pl.ds(0, CK), :].astype(jnp.float32)
                s_tot = jnp.sum(slab, axis=0, keepdims=True)
                m_tot = jnp.max(slab, axis=0, keepdims=True)
            elif n_chunks >= 2:
                def body(ci, carry):
                    s, m = carry
                    start = pl.multiple_of(ci * CK, CK)
                    slab = x_ref[b, pl.ds(start, CK), :].astype(jnp.float32)
                    return s + slab, jnp.maximum(m, slab)

                first = x_ref[b, pl.ds(0, CK), :].astype(jnp.float32)
                s_p, m_p = lax.fori_loop(1, n_chunks, body, (first, first))
                s_tot = jnp.sum(s_p, axis=0, keepdims=True)     # (1, HWp)
                m_tot = jnp.max(m_p, axis=0, keepdims=True)     # (1, HWp)
            if rem:
                start = n_chunks * CK
                slab = x_ref[b, pl.ds(start, rem), :].astype(jnp.float32)
                sr = jnp.sum(slab, axis=0, keepdims=True)
                mr = jnp.max(slab, axis=0, keepdims=True)
                s_tot = sr if s_tot is None else s_tot + sr
                m_tot = mr if m_tot is None else jnp.maximum(m_tot, mr)

            avg_sc[pl.ds(b, 1), :] = s_tot * inv_c
            max_sc[pl.ds(b, 1), :] = m_tot

        avg_p = avg_sc[...]          # (Nb, HWp)
        max_p = max_sc[...]

        # Hoisted mask rows (each (1, HWp)), reused across all Nb rows.
        mhs = [mh_ref[pl.ds(k, 1), :] for k in range(KSIZE)]
        mws = [mw_ref[pl.ds(k, 1), :] for k in range(KSIZE)]

        # ---- 7x7 'same' conv, shift-decomposed in the flattened domain ----
        # Stage 1: row shifts (dh*W), row-mask once per kh; accumulate the
        # 49 weighted taps (avg & max merged) into 7 per-kw accumulators.
        t = [jnp.zeros((Nb, HWp), jnp.float32) for _ in range(KSIZE)]
        for kh in range(KSIZE):
            dh = kh - PAD
            sh = (-(dh * W)) % HWp                      # result[p] = plane[p + dh*W]
            ra = avg_p if sh == 0 else pltpu.roll(avg_p, sh, 1)
            rm = max_p if sh == 0 else pltpu.roll(max_p, sh, 1)
            if dh != 0:                                 # dh==0 row mask is a no-op for valid lanes
                ra = ra * mhs[kh]
                rm = rm * mhs[kh]
            for kw in range(KSIZE):
                wa = w_ref[kh * KSIZE + kw]                      # channel 0 = avg
                wm = w_ref[KSIZE * KSIZE + kh * KSIZE + kw]      # channel 1 = max
                t[kw] = t[kw] + ra * wa + rm * wm

        # Stage 2: column shifts (dw), column mask, final accumulation.
        acc = None
        for kw in range(KSIZE):
            dw = kw - PAD
            sw = (-dw) % HWp                            # result[p] = t[p + dw]
            tt = t[kw] if sw == 0 else pltpu.roll(t[kw], sw, 1)
            if dw != 0:                                 # dw==0 column mask is all-ones
                tt = tt * mws[kw]
            acc = tt if acc is None else acc + tt

        res = jax.nn.sigmoid(acc).astype(o_ref.dtype)   # (Nb, HWp)
        for b in range(Nb):
            o_ref[b] = res[b:b + 1, :]                  # lane-dense row store

    return kernel


def spatial_attention(x, weight, *, max_block_n=8, vmem_block_budget=20 * 2**20):
    """x: (N, C, H, W); weight: (1, 2, 7, 7).  Returns (N, 1, H, W)."""
    N, C, H, W = x.shape
    HW = H * W
    HWp = _round_up(HW, 128)                     # lane-dense flattened extent

    # Flatten spatial dims (free reshape in XLA); pad lanes to a 128 multiple.
    x_flat = x.reshape(N, C, HW)
    if HWp != HW:
        x_flat = jnp.pad(x_flat, ((0, 0), (0, 0), (0, HWp - HW)))

    # Conv weights -> flat SMEM vector (channel-major: all avg taps, all max taps).
    w_flat = weight.reshape(-1).astype(jnp.float32)              # (98,)

    # Precomputed {0,1} edge-validity masks for the flattened conv taps.
    p = np.arange(HWp)
    row = p // W
    col = p % W
    mask_h = np.stack([((row + d) >= 0) & ((row + d) < H)
                       for d in range(-PAD, PAD + 1)]).astype(np.float32)   # (7, HWp)
    mask_w = np.stack([((col + d) >= 0) & ((col + d) < W)
                       for d in range(-PAD, PAD + 1)]).astype(np.float32)   # (7, HWp)

    # Batch elements per grid step, capped by a VMEM budget covering the
    # double-buffered input block plus conv temporaries/scratch/output.
    itemsize = jnp.dtype(x.dtype).itemsize
    per_batch = 2 * C * HWp * itemsize + 20 * HWp * 4
    Nb = int(max(1, min(N, max_block_n, vmem_block_budget // max(per_batch, 1))))
    n_blocks = pl.cdiv(N, Nb)

    est_vmem = (2 * Nb * C * HWp * itemsize      # input (double-buffered)
                + 2 * Nb * HWp * itemsize        # output (double-buffered)
                + 2 * KSIZE * HWp * 4            # masks
                + 2 * Nb * HWp * 4               # scratch planes
                + 14 * Nb * HWp * 4              # conv accumulators / rolled temps
                + (2 << 20))                     # slack
    vmem_limit = int(min(max(2 * est_vmem, 32 * 2**20), 64 * 2**20))

    kernel = _make_kernel(Nb, C, W, HWp)

    out_flat = pl.pallas_call(
        kernel,
        out_shape=jax.ShapeDtypeStruct((N, 1, HWp), x.dtype),
        grid=(n_blocks,),
        in_specs=[
            pl.BlockSpec(memory_space=pltpu.MemorySpace.SMEM),   # conv weights
            pl.BlockSpec((KSIZE, HWp), lambda n: (0, 0)),        # mask_h (resident)
            pl.BlockSpec((KSIZE, HWp), lambda n: (0, 0)),        # mask_w (resident)
            pl.BlockSpec((Nb, C, HWp), lambda n: (n, 0, 0)),     # x block
        ],
        out_specs=pl.BlockSpec((Nb, 1, HWp), lambda n: (n, 0, 0)),
        scratch_shapes=[
            pltpu.VMEM((Nb, HWp), jnp.float32),                  # avg planes
            pltpu.VMEM((Nb, HWp), jnp.float32),                  # max planes
        ],
        compiler_params=pltpu.CompilerParams(
            dimension_semantics=("parallel",),
            vmem_limit_bytes=vmem_limit,
        ),
    )(w_flat, jnp.asarray(mask_h), jnp.asarray(mask_w), x_flat)

    return out_flat[:, :, :HW].reshape(N, 1, H, W)


def spatial_attention_ref(x, weight):
    """Pure-JAX reference matching the PyTorch module."""
    avg = jnp.mean(x, axis=1, keepdims=True)
    mx = jnp.max(x, axis=1, keepdims=True)
    cat = jnp.concatenate([avg, mx], axis=1)                     # (N, 2, H, W)
    y = lax.conv_general_dilated(
        cat, weight,
        window_strides=(1, 1),
        padding=((PAD, PAD), (PAD, PAD)),
        dimension_numbers=("NCHW", "OIHW", "NCHW"),
    )
    return jax.nn.sigmoid(y)


if __name__ == "__main__":
    key = jax.random.PRNGKey(0)
    kx, kw = jax.random.split(key)

    N, C, H, W = 2, 4, 16, 16
    x = jax.random.normal(kx, (N, C, H, W), dtype=jnp.float32)

    # Deterministic conv weight init (Conv2d(2, 1, 7, bias=False)) — kaiming-uniform-like.
    fan_in = 2 * KSIZE * KSIZE
    bound = 1.0 / (fan_in ** 0.5)
    weight = jax.random.uniform(
        kw, (1, 2, KSIZE, KSIZE), dtype=jnp.float32, minval=-bound, maxval=bound)

    out = spatial_attention(x, weight)
    out = jax.block_until_ready(out)

    ref = spatial_attention_ref(x, weight)
    assert out.shape == (N, 1, H, W)
    assert jnp.allclose(out, ref, atol=1e-4, rtol=1e-4), "mismatch vs JAX reference"

    print("KERNEL_OK")
</pallas_src>

<mosaic_0001>
module attributes {stable_mosaic.version = 11 : i64} {
  func.func @kernel(%arg0: i32, %arg1: memref<98xf32, #tpu.memory_space<smem>>, %arg2: memref<7x256xf32, #tpu.memory_space<vmem>>, %arg3: memref<7x256xf32, #tpu.memory_space<vmem>>, %arg4: memref<2x4x256xf32, #tpu.memory_space<vmem>>, %arg5: memref<2x1x256xf32, #tpu.memory_space<vmem>>, %arg6: memref<2x256xf32, #tpu.memory_space<vmem>>, %arg7: memref<2x256xf32, #tpu.memory_space<vmem>>) attributes {dimension_semantics = [#tpu.dimension_semantics<parallel>], iteration_bounds = array<i64: 1>, scalar_prefetch = 0 : i64, scratch_operands = 2 : i64, tpu.core_type = #tpu.core_type<tc>, window_params = [{transform_indices = @transform_0, window_bounds = array<i64: 98>}, {pipeline_mode = #tpu.pipeline_mode<synchronous>, transform_indices = @transform_1, window_bounds = array<i64: 7, 256>}, {pipeline_mode = #tpu.pipeline_mode<synchronous>, transform_indices = @transform_2, window_bounds = array<i64: 7, 256>}, {transform_indices = @transform_3, window_bounds = array<i64: 2, 4, 256>}, {transform_indices = @transform_4, window_bounds = array<i64: 2, 1, 256>}]} {
    %c0 = arith.constant 0 : index
    %c0_0 = arith.constant 0 : index
    %c0_1 = arith.constant 0 : index
    %0 = vector.load %arg4[%c0, %c0_0, %c0_1] : memref<2x4x256xf32, #tpu.memory_space<vmem>>, vector<1x4x256xf32>
    %1 = vector.shape_cast %0 : vector<1x4x256xf32> to vector<4x256xf32>
    %cst = arith.constant dense<0.000000e+00> : vector<256xf32>
    %2 = vector.multi_reduction <add>, %1, %cst [0] : vector<4x256xf32> to vector<256xf32>
    %3 = vector.shape_cast %2 : vector<256xf32> to vector<1x256xf32>
    %cst_2 = arith.constant dense<0xFF800000> : vector<256xf32>
    %4 = vector.multi_reduction <maximumf>, %1, %cst_2 [0] : vector<4x256xf32> to vector<256xf32>
    %5 = vector.shape_cast %4 : vector<256xf32> to vector<1x256xf32>
    %cst_3 = arith.constant 2.500000e-01 : f32
    %6 = vector.broadcast %cst_3 : f32 to vector<1x256xf32>
    %7 = arith.mulf %3, %6 : vector<1x256xf32>
    %c0_4 = arith.constant 0 : index
    %c0_5 = arith.constant 0 : index
    %8 = vector.load %arg6[%c0_4, %c0_5] : memref<2x256xf32, #tpu.memory_space<vmem>>, vector<1x256xf32>
    tpu.vector_store %arg6[%c0_4, %c0_5], %7 {strides = array<i32>} : memref<2x256xf32, #tpu.memory_space<vmem>>, vector<1x256xf32>,
    %c0_6 = arith.constant 0 : index
    %c0_7 = arith.constant 0 : index
    %9 = vector.load %arg7[%c0_6, %c0_7] : memref<2x256xf32, #tpu.memory_space<vmem>>, vector<1x256xf32>
    tpu.vector_store %arg7[%c0_6, %c0_7], %5 {strides = array<i32>} : memref<2x256xf32, #tpu.memory_space<vmem>>, vector<1x256xf32>,
    %c1 = arith.constant 1 : index
    %c0_8 = arith.constant 0 : index
    %c0_9 = arith.constant 0 : index
    %10 = vector.load %arg4[%c1, %c0_8, %c0_9] : memref<2x4x256xf32, #tpu.memory_space<vmem>>, vector<1x4x256xf32>
    %11 = vector.shape_cast %10 : vector<1x4x256xf32> to vector<4x256xf32>
    %cst_10 = arith.constant dense<0.000000e+00> : vector<256xf32>
    %12 = vector.multi_reduction <add>, %11, %cst_10 [0] : vector<4x256xf32> to vector<256xf32>
    %13 = vector.shape_cast %12 : vector<256xf32> to vector<1x256xf32>
    %cst_11 = arith.constant dense<0xFF800000> : vector<256xf32>
    %14 = vector.multi_reduction <maximumf>, %11, %cst_11 [0] : vector<4x256xf32> to vector<256xf32>
    %15 = vector.shape_cast %14 : vector<256xf32> to vector<1x256xf32>
    %cst_12 = arith.constant 2.500000e-01 : f32
    %16 = vector.broadcast %cst_12 : f32 to vector<1x256xf32>
    %17 = arith.mulf %13, %16 : vector<1x256xf32>
    %c1_13 = arith.constant 1 : index
    %c0_14 = arith.constant 0 : index
    %18 = vector.load %arg6[%c1_13, %c0_14] : memref<2x256xf32, #tpu.memory_space<vmem>>, vector<1x256xf32>
    tpu.vector_store %arg6[%c1_13, %c0_14], %17 {strides = array<i32>} : memref<2x256xf32, #tpu.memory_space<vmem>>, vector<1x256xf32>,
    %c1_15 = arith.constant 1 : index
    %c0_16 = arith.constant 0 : index
    %19 = vector.load %arg7[%c1_15, %c0_16] : memref<2x256xf32, #tpu.memory_space<vmem>>, vector<1x256xf32>
    tpu.vector_store %arg7[%c1_15, %c0_16], %15 {strides = array<i32>} : memref<2x256xf32, #tpu.memory_space<vmem>>, vector<1x256xf32>,
    %c0_17 = arith.constant 0 : index
    %c0_18 = arith.constant 0 : index
    %20 = vector.load %arg6[%c0_17, %c0_18] : memref<2x256xf32, #tpu.memory_space<vmem>>, vector<2x256xf32>
    %c0_19 = arith.constant 0 : index
    %c0_20 = arith.constant 0 : index
    %21 = vector.load %arg7[%c0_19, %c0_20] : memref<2x256xf32, #tpu.memory_space<vmem>>, vector<2x256xf32>
    %c0_21 = arith.constant 0 : index
    %c0_22 = arith.constant 0 : index
    %22 = vector.load %arg2[%c0_21, %c0_22] : memref<7x256xf32, #tpu.memory_space<vmem>>, vector<1x256xf32>
    %c1_23 = arith.constant 1 : index
    %c0_24 = arith.constant 0 : index
    %23 = vector.load %arg2[%c1_23, %c0_24] : memref<7x256xf32, #tpu.memory_space<vmem>>, vector<1x256xf32>
    %c2 = arith.constant 2 : index
    %c0_25 = arith.constant 0 : index
    %24 = vector.load %arg2[%c2, %c0_25] : memref<7x256xf32, #tpu.memory_space<vmem>>, vector<1x256xf32>
    %c4 = arith.constant 4 : index
    %c0_26 = arith.constant 0 : index
    %25 = vector.load %arg2[%c4, %c0_26] : memref<7x256xf32, #tpu.memory_space<vmem>>, vector<1x256xf32>
    %c5 = arith.constant 5 : index
    %c0_27 = arith.constant 0 : index
    %26 = vector.load %arg2[%c5, %c0_27] : memref<7x256xf32, #tpu.memory_space<vmem>>, vector<1x256xf32>
    %c6 = arith.constant 6 : index
    %c0_28 = arith.constant 0 : index
    %27 = vector.load %arg2[%c6, %c0_28] : memref<7x256xf32, #tpu.memory_space<vmem>>, vector<1x256xf32>
    %c0_29 = arith.constant 0 : index
    %c0_30 = arith.constant 0 : index
    %28 = vector.load %arg3[%c0_29, %c0_30] : memref<7x256xf32, #tpu.memory_space<vmem>>, vector<1x256xf32>
    %c1_31 = arith.constant 1 : index
    %c0_32 = arith.constant 0 : index
    %29 = vector.load %arg3[%c1_31, %c0_32] : memref<7x256xf32, #tpu.memory_space<vmem>>, vector<1x256xf32>
    %c2_33 = arith.constant 2 : index
    %c0_34 = arith.constant 0 : index
    %30 = vector.load %arg3[%c2_33, %c0_34] : memref<7x256xf32, #tpu.memory_space<vmem>>, vector<1x256xf32>
    %c4_35 = arith.constant 4 : index
    %c0_36 = arith.constant 0 : index
    %31 = vector.load %arg3[%c4_35, %c0_36] : memref<7x256xf32, #tpu.memory_space<vmem>>, vector<1x256xf32>
    %c5_37 = arith.constant 5 : index
    %c0_38 = arith.constant 0 : index
    %32 = vector.load %arg3[%c5_37, %c0_38] : memref<7x256xf32, #tpu.memory_space<vmem>>, vector<1x256xf32>
    %c6_39 = arith.constant 6 : index
    %c0_40 = arith.constant 0 : index
    %33 = vector.load %arg3[%c6_39, %c0_40] : memref<7x256xf32, #tpu.memory_space<vmem>>, vector<1x256xf32>
    %cst_41 = arith.constant 0.000000e+00 : f32
    %34 = vector.broadcast %cst_41 : f32 to vector<2x256xf32>
    %cst_42 = arith.constant 0.000000e+00 : f32
    %35 = vector.broadcast %cst_42 : f32 to vector<2x256xf32>
    %cst_43 = arith.constant 0.000000e+00 : f32
    %36 = vector.broadcast %cst_43 : f32 to vector<2x256xf32>
    %cst_44 = arith.constant 0.000000e+00 : f32
    %37 = vector.broadcast %cst_44 : f32 to vector<2x256xf32>
    %cst_45 = arith.constant 0.000000e+00 : f32
    %38 = vector.broadcast %cst_45 : f32 to vector<2x256xf32>
    %cst_46 = arith.constant 0.000000e+00 : f32
    %39 = vector.broadcast %cst_46 : f32 to vector<2x256xf32>
    %cst_47 = arith.constant 0.000000e+00 : f32
    %40 = vector.broadcast %cst_47 : f32 to vector<2x256xf32>
    %c48_i32 = arith.constant 48 : i32
    %41 = tpu.dynamic_rotate %20 by %c48_i32 dim 1 : vector<2x256xf32>, i32 -> vector<2x256xf32>
    %c48_i32_48 = arith.constant 48 : i32
    %42 = tpu.dynamic_rotate %21 by %c48_i32_48 dim 1 : vector<2x256xf32>, i32 -> vector<2x256xf32>
    %43 = vector.broadcast %22 : vector<1x256xf32> to vector<2x256xf32>
    %44 = arith.mulf %41, %43 : vector<2x256xf32>
    %45 = vector.broadcast %22 : vector<1x256xf32> to vector<2x256xf32>
    %46 = arith.mulf %42, %45 : vector<2x256xf32>
    %c0_49 = arith.constant 0 : index
    %47 = memref.load %arg1[%c0_49] : memref<98xf32, #tpu.memory_space<smem>>
    %c49 = arith.constant 49 : index
    %48 = memref.load %arg1[%c49] : memref<98xf32, #tpu.memory_space<smem>>
    %49 = vector.broadcast %47 : f32 to vector<2x256xf32>
    %50 = arith.mulf %44, %49 : vector<2x256xf32>
    %51 = arith.addf %34, %50 : vector<2x256xf32>
    %52 = vector.broadcast %48 : f32 to vector<2x256xf32>
    %53 = arith.mulf %46, %52 : vector<2x256xf32>
    %54 = arith.addf %51, %53 : vector<2x256xf32>
    %c1_50 = arith.constant 1 : index
    %55 = memref.load %arg1[%c1_50] : memref<98xf32, #tpu.memory_space<smem>>
    %c50 = arith.constant 50 : index
    %56 = memref.load %arg1[%c50] : memref<98xf32, #tpu.memory_space<smem>>
    %57 = vector.broadcast %55 : f32 to vector<2x256xf32>
    %58 = arith.mulf %44, %57 : vector<2x256xf32>
    %59 = arith.addf %35, %58 : vector<2x256xf32>
    %60 = vector.broadcast %56 : f32 to vector<2x256xf32>
    %61 = arith.mulf %46, %60 : vector<2x256xf32>
    %62 = arith.addf %59, %61 : vector<2x256xf32>
    %c2_51 = arith.constant 2 : index
    %63 = memref.load %arg1[%c2_51] : memref<98xf32, #tpu.memory_space<smem>>
    %c51 = arith.constant 51 : index
    %64 = memref.load %arg1[%c51] : memref<98xf32, #tpu.memory_space<smem>>
    %65 = vector.broadcast %63 : f32 to vector<2x256xf32>
    %66 = arith.mulf %44, %65 : vector<2x256xf32>
    %67 = arith.addf %36, %66 : vector<2x256xf32>
    %68 = vector.broadcast %64 : f32 to vector<2x256xf32>
    %69 = arith.mulf %46, %68 : vector<2x256xf32>
    %70 = arith.addf %67, %69 : vector<2x256xf32>
    %c3 = arith.constant 3 : index
    %71 = memref.load %arg1[%c3] : memref<98xf32, #tpu.memory_space<smem>>
    %c52 = arith.constant 52 : index
    %72 = memref.load %arg1[%c52] : memref<98xf32, #tpu.memory_space<smem>>
    %73 = vector.broadcast %71 : f32 to vector<2x256xf32>
    %74 = arith.mulf %44, %73 : vector<2x256xf32>
    %75 = arith.addf %37, %74 : vector<2x256xf32>
    %76 = vector.broadcast %72 : f32 to vector<2x256xf32>
    %77 = arith.mulf %46, %76 : vector<2x256xf32>
    %78 = arith.addf %75, %77 : vector<2x256xf32>
    %c4_52 = arith.constant 4 : index
    %79 = memref.load %arg1[%c4_52] : memref<98xf32, #tpu.memory_space<smem>>
    %c53 = arith.constant 53 : index
    %80 = memref.load %arg1[%c53] : memref<98xf32, #tpu.memory_space<smem>>
    %81 = vector.broadcast %79 : f32 to vector<2x256xf32>
    %82 = arith.mulf %44, %81 : vector<2x256xf32>
    %83 = arith.addf %38, %82 : vector<2x256xf32>
    %84 = vector.broadcast %80 : f32 to vector<2x256xf32>
    %85 = arith.mulf %46, %84 : vector<2x256xf32>
    %86 = arith.addf %83, %85 : vector<2x256xf32>
    %c5_53 = arith.constant 5 : index
    %87 = memref.load %arg1[%c5_53] : memref<98xf32, #tpu.memory_space<smem>>
    %c54 = arith.constant 54 : index
    %88 = memref.load %arg1[%c54] : memref<98xf32, #tpu.memory_space<smem>>
    %89 = vector.broadcast %87 : f32 to vector<2x256xf32>
    %90 = arith.mulf %44, %89 : vector<2x256xf32>
    %91 = arith.addf %39, %90 : vector<2x256xf32>
    %92 = vector.broadcast %88 : f32 to vector<2x256xf32>
    %93 = arith.mulf %46, %92 : vector<2x256xf32>
    %94 = arith.addf %91, %93 : vector<2x256xf32>
    %c6_54 = arith.constant 6 : index
    %95 = memref.load %arg1[%c6_54] : memref<98xf32, #tpu.memory_space<smem>>
    %c55 = arith.constant 55 : index
    %96 = memref.load %arg1[%c55] : memref<98xf32, #tpu.memory_space<smem>>
    %97 = vector.broadcast %95 : f32 to vector<2x256xf32>
    %98 = arith.mulf %44, %97 : vector<2x256xf32>
    %99 = arith.addf %40, %98 : vector<2x256xf32>
    %100 = vector.broadcast %96 : f32 to vector<2x256xf32>
    %101 = arith.mulf %46, %100 : vector<2x256xf32>
    %102 = arith.addf %99, %101 : vector<2x256xf32>
    %c32_i32 = arith.constant 32 : i32
    %103 = tpu.dynamic_rotate %20 by %c32_i32 dim 1 : vector<2x256xf32>, i32 -> vector<2x256xf32>
    %c32_i32_55 = arith.constant 32 : i32
    %104 = tpu.dynamic_rotate %21 by %c32_i32_55 dim 1 : vector<2x256xf32>, i32 -> vector<2x256xf32>
    %105 = vector.broadcast %23 : vector<1x256xf32> to vector<2x256xf32>
    %106 = arith.mulf %103, %105 : vector<2x256xf32>
    %107 = vector.broadcast %23 : vector<1x256xf32> to vector<2x256xf32>
    %108 = arith.mulf %104, %107 : vector<2x256xf32>
    %c7 = arith.constant 7 : index
    %109 = memref.load %arg1[%c7] : memref<98xf32, #tpu.memory_space<smem>>
    %c56 = arith.constant 56 : index
    %110 = memref.load %arg1[%c56] : memref<98xf32, #tpu.memory_space<smem>>
    %111 = vector.broadcast %109 : f32 to vector<2x256xf32>
    %112 = arith.mulf %106, %111 : vector<2x256xf32>
    %113 = arith.addf %54, %112 : vector<2x256xf32>
    %114 = vector.broadcast %110 : f32 to vector<2x256xf32>
    %115 = arith.mulf %108, %114 : vector<2x256xf32>
    %116 = arith.addf %113, %115 : vector<2x256xf32>
    %c8 = arith.constant 8 : index
    %117 = memref.load %arg1[%c8] : memref<98xf32, #tpu.memory_space<smem>>
    %c57 = arith.constant 57 : index
    %118 = memref.load %arg1[%c57] : memref<98xf32, #tpu.memory_space<smem>>
    %119 = vector.broadcast %117 : f32 to vector<2x256xf32>
    %120 = arith.mulf %106, %119 : vector<2x256xf32>
    %121 = arith.addf %62, %120 : vector<2x256xf32>
    %122 = vector.broadcast %118 : f32 to vector<2x256xf32>
    %123 = arith.mulf %108, %122 : vector<2x256xf32>
    %124 = arith.addf %121, %123 : vector<2x256xf32>
    %c9 = arith.constant 9 : index
    %125 = memref.load %arg1[%c9] : memref<98xf32, #tpu.memory_space<smem>>
    %c58 = arith.constant 58 : index
    %126 = memref.load %arg1[%c58] : memref<98xf32, #tpu.memory_space<smem>>
    %127 = vector.broadcast %125 : f32 to vector<2x256xf32>
    %128 = arith.mulf %106, %127 : vector<2x256xf32>
    %129 = arith.addf %70, %128 : vector<2x256xf32>
    %130 = vector.broadcast %126 : f32 to vector<2x256xf32>
    %131 = arith.mulf %108, %130 : vector<2x256xf32>
    %132 = arith.addf %129, %131 : vector<2x256xf32>
    %c10 = arith.constant 10 : index
    %133 = memref.load %arg1[%c10] : memref<98xf32, #tpu.memory_space<smem>>
    %c59 = arith.constant 59 : index
    %134 = memref.load %arg1[%c59] : memref<98xf32, #tpu.memory_space<smem>>
    %135 = vector.broadcast %133 : f32 to vector<2x256xf32>
    %136 = arith.mulf %106, %135 : vector<2x256xf32>
    %137 = arith.addf %78, %136 : vector<2x256xf32>
    %138 = vector.broadcast %134 : f32 to vector<2x256xf32>
    %139 = arith.mulf %108, %138 : vector<2x256xf32>
    %140 = arith.addf %137, %139 : vector<2x256xf32>
    %c11 = arith.constant 11 : index
    %141 = memref.load %arg1[%c11] : memref<98xf32, #tpu.memory_space<smem>>
    %c60 = arith.constant 60 : index
    %142 = memref.load %arg1[%c60] : memref<98xf32, #tpu.memory_space<smem>>
    %143 = vector.broadcast %141 : f32 to vector<2x256xf32>
    %144 = arith.mulf %106, %143 : vector<2x256xf32>
    %145 = arith.addf %86, %144 : vector<2x256xf32>
    %146 = vector.broadcast %142 : f32 to vector<2x256xf32>
    %147 = arith.mulf %108, %146 : vector<2x256xf32>
    %148 = arith.addf %145, %147 : vector<2x256xf32>
    %c12 = arith.constant 12 : index
    %149 = memref.load %arg1[%c12] : memref<98xf32, #tpu.memory_space<smem>>
    %c61 = arith.constant 61 : index
    %150 = memref.load %arg1[%c61] : memref<98xf32, #tpu.memory_space<smem>>
    %151 = vector.broadcast %149 : f32 to vector<2x256xf32>
    %152 = arith.mulf %106, %151 : vector<2x256xf32>
    %153 = arith.addf %94, %152 : vector<2x256xf32>
    %154 = vector.broadcast %150 : f32 to vector<2x256xf32>
    %155 = arith.mulf %108, %154 : vector<2x256xf32>
    %156 = arith.addf %153, %155 : vector<2x256xf32>
    %c13 = arith.constant 13 : index
    %157 = memref.load %arg1[%c13] : memref<98xf32, #tpu.memory_space<smem>>
    %c62 = arith.constant 62 : index
    %158 = memref.load %arg1[%c62] : memref<98xf32, #tpu.memory_space<smem>>
    %159 = vector.broadcast %157 : f32 to vector<2x256xf32>
    %160 = arith.mulf %106, %159 : vector<2x256xf32>
    %161 = arith.addf %102, %160 : vector<2x256xf32>
    %162 = vector.broadcast %158 : f32 to vector<2x256xf32>
    %163 = arith.mulf %108, %162 : vector<2x256xf32>
    %164 = arith.addf %161, %163 : vector<2x256xf32>
    %c16_i32 = arith.constant 16 : i32
    %165 = tpu.dynamic_rotate %20 by %c16_i32 dim 1 : vector<2x256xf32>, i32 -> vector<2x256xf32>
    %c16_i32_56 = arith.constant 16 : i32
    %166 = tpu.dynamic_rotate %21 by %c16_i32_56 dim 1 : vector<2x256xf32>, i32 -> vector<2x256xf32>
    %167 = vector.broadcast %24 : vector<1x256xf32> to vector<2x256xf32>
    %168 = arith.mulf %165, %167 : vector<2x256xf32>
    %169 = vector.broadcast %24 : vector<1x256xf32> to vector<2x256xf32>
    %170 = arith.mulf %166, %169 : vector<2x256xf32>
    %c14 = arith.constant 14 : index
    %171 = memref.load %arg1[%c14] : memref<98xf32, #tpu.memory_space<smem>>
    %c63 = arith.constant 63 : index
    %172 = memref.load %arg1[%c63] : memref<98xf32, #tpu.memory_space<smem>>
    %173 = vector.broadcast %171 : f32 to vector<2x256xf32>
    %174 = arith.mulf %168, %173 : vector<2x256xf32>
    %175 = arith.addf %116, %174 : vector<2x256xf32>
    %176 = vector.broadcast %172 : f32 to vector<2x256xf32>
    %177 = arith.mulf %170, %176 : vector<2x256xf32>
    %178 = arith.addf %175, %177 : vector<2x256xf32>
    %c15 = arith.constant 15 : index
    %179 = memref.load %arg1[%c15] : memref<98xf32, #tpu.memory_space<smem>>
    %c64 = arith.constant 64 : index
    %180 = memref.load %arg1[%c64] : memref<98xf32, #tpu.memory_space<smem>>
    %181 = vector.broadcast %179 : f32 to vector<2x256xf32>
    %182 = arith.mulf %168, %181 : vector<2x256xf32>
    %183 = arith.addf %124, %182 : vector<2x256xf32>
    %184 = vector.broadcast %180 : f32 to vector<2x256xf32>
    %185 = arith.mulf %170, %184 : vector<2x256xf32>
    %186 = arith.addf %183, %185 : vector<2x256xf32>
    %c16 = arith.constant 16 : index
    %187 = memref.load %arg1[%c16] : memref<98xf32, #tpu.memory_space<smem>>
    %c65 = arith.constant 65 : index
    %188 = memref.load %arg1[%c65] : memref<98xf32, #tpu.memory_space<smem>>
    %189 = vector.broadcast %187 : f32 to vector<2x256xf32>
    %190 = arith.mulf %168, %189 : vector<2x256xf32>
    %191 = arith.addf %132, %190 : vector<2x256xf32>
    %192 = vector.broadcast %188 : f32 to vector<2x256xf32>
    %193 = arith.mulf %170, %192 : vector<2x256xf32>
    %194 = arith.addf %191, %193 : vector<2x256xf32>
    %c17 = arith.constant 17 : index
    %195 = memref.load %arg1[%c17] : memref<98xf32, #tpu.memory_space<smem>>
    %c66 = arith.constant 66 : index
    %196 = memref.load %arg1[%c66] : memref<98xf32, #tpu.memory_space<smem>>
    %197 = vector.broadcast %195 : f32 to vector<2x256xf32>
    %198 = arith.mulf %168, %197 : vector<2x256xf32>
    %199 = arith.addf %140, %198 : vector<2x256xf32>
    %200 = vector.broadcast %196 : f32 to vector<2x256xf32>
    %201 = arith.mulf %170, %200 : vector<2x256xf32>
    %202 = arith.addf %199, %201 : vector<2x256xf32>
    %c18 = arith.constant 18 : index
    %203 = memref.load %arg1[%c18] : memref<98xf32, #tpu.memory_space<smem>>
    %c67 = arith.constant 67 : index
    %204 = memref.load %arg1[%c67] : memref<98xf32, #tpu.memory_space<smem>>
    %205 = vector.broadcast %203 : f32 to vector<2x256xf32>
    %206 = arith.mulf %168, %205 : vector<2x256xf32>
    %207 = arith.addf %148, %206 : vector<2x256xf32>
    %208 = vector.broadcast %204 : f32 to vector<2x256xf32>
    %209 = arith.mulf %170, %208 : vector<2x256xf32>
    %210 = arith.addf %207, %209 : vector<2x256xf32>
    %c19 = arith.constant 19 : index
    %211 = memref.load %arg1[%c19] : memref<98xf32, #tpu.memory_space<smem>>
    %c68 = arith.constant 68 : index
    %212 = memref.load %arg1[%c68] : memref<98xf32, #tpu.memory_space<smem>>
    %213 = vector.broadcast %211 : f32 to vector<2x256xf32>
    %214 = arith.mulf %168, %213 : vector<2x256xf32>
    %215 = arith.addf %156, %214 : vector<2x256xf32>
    %216 = vector.broadcast %212 : f32 to vector<2x256xf32>
    %217 = arith.mulf %170, %216 : vector<2x256xf32>
    %218 = arith.addf %215, %217 : vector<2x256xf32>
    %c20 = arith.constant 20 : index
    %219 = memref.load %arg1[%c20] : memref<98xf32, #tpu.memory_space<smem>>
    %c69 = arith.constant 69 : index
    %220 = memref.load %arg1[%c69] : memref<98xf32, #tpu.memory_space<smem>>
    %221 = vector.broadcast %219 : f32 to vector<2x256xf32>
    %222 = arith.mulf %168, %221 : vector<2x256xf32>
    %223 = arith.addf %164, %222 : vector<2x256xf32>
    %224 = vector.broadcast %220 : f32 to vector<2x256xf32>
    %225 = arith.mulf %170, %224 : vector<2x256xf32>
    %226 = arith.addf %223, %225 : vector<2x256xf32>
    %c21 = arith.constant 21 : index
    %227 = memref.load %arg1[%c21] : memref<98xf32, #tpu.memory_space<smem>>
    %c70 = arith.constant 70 : index
    %228 = memref.load %arg1[%c70] : memref<98xf32, #tpu.memory_space<smem>>
    %229 = vector.broadcast %227 : f32 to vector<2x256xf32>
    %230 = arith.mulf %20, %229 : vector<2x256xf32>
    %231 = arith.addf %178, %230 : vector<2x256xf32>
    %232 = vector.broadcast %228 : f32 to vector<2x256xf32>
    %233 = arith.mulf %21, %232 : vector<2x256xf32>
    %234 = arith.addf %231, %233 : vector<2x256xf32>
    %c22 = arith.constant 22 : index
    %235 = memref.load %arg1[%c22] : memref<98xf32, #tpu.memory_space<smem>>
    %c71 = arith.constant 71 : index
    %236 = memref.load %arg1[%c71] : memref<98xf32, #tpu.memory_space<smem>>
    %237 = vector.broadcast %235 : f32 to vector<2x256xf32>
    %238 = arith.mulf %20, %237 : vector<2x256xf32>
    %239 = arith.addf %186, %238 : vector<2x256xf32>
    %240 = vector.broadcast %236 : f32 to vector<2x256xf32>
    %241 = arith.mulf %21, %240 : vector<2x256xf32>
    %242 = arith.addf %239, %241 : vector<2x256xf32>
    %c23 = arith.constant 23 : index
    %243 = memref.load %arg1[%c23] : memref<98xf32, #tpu.memory_space<smem>>
    %c72 = arith.constant 72 : index
    %244 = memref.load %arg1[%c72] : memref<98xf32, #tpu.memory_space<smem>>
    %245 = vector.broadcast %243 : f32 to vector<2x256xf32>
    %246 = arith.mulf %20, %245 : vector<2x256xf32>
    %247 = arith.addf %194, %246 : vector<2x256xf32>
    %248 = vector.broadcast %244 : f32 to vector<2x256xf32>
    %249 = arith.mulf %21, %248 : vector<2x256xf32>
    %250 = arith.addf %247, %249 : vector<2x256xf32>
    %c24 = arith.constant 24 : index
    %251 = memref.load %arg1[%c24] : memref<98xf32, #tpu.memory_space<smem>>
    %c73 = arith.constant 73 : index
    %252 = memref.load %arg1[%c73] : memref<98xf32, #tpu.memory_space<smem>>
    %253 = vector.broadcast %251 : f32 to vector<2x256xf32>
    %254 = arith.mulf %20, %253 : vector<2x256xf32>
    %255 = arith.addf %202, %254 : vector<2x256xf32>
    %256 = vector.broadcast %252 : f32 to vector<2x256xf32>
    %257 = arith.mulf %21, %256 : vector<2x256xf32>
    %258 = arith.addf %255, %257 : vector<2x256xf32>
    %c25 = arith.constant 25 : index
    %259 = memref.load %arg1[%c25] : memref<98xf32, #tpu.memory_space<smem>>
    %c74 = arith.constant 74 : index
    %260 = memref.load %arg1[%c74] : memref<98xf32, #tpu.memory_space<smem>>
    %261 = vector.broadcast %259 : f32 to vector<2x256xf32>
    %262 = arith.mulf %20, %261 : vector<2x256xf32>
    %263 = arith.addf %210, %262 : vector<2x256xf32>
    %264 = vector.broadcast %260 : f32 to vector<2x256xf32>
    %265 = arith.mulf %21, %264 : vector<2x256xf32>
    %266 = arith.addf %263, %265 : vector<2x256xf32>
    %c26 = arith.constant 26 : index
    %267 = memref.load %arg1[%c26] : memref<98xf32, #tpu.memory_space<smem>>
    %c75 = arith.constant 75 : index
    %268 = memref.load %arg1[%c75] : memref<98xf32, #tpu.memory_space<smem>>
    %269 = vector.broadcast %267 : f32 to vector<2x256xf32>
    %270 = arith.mulf %20, %269 : vector<2x256xf32>
    %271 = arith.addf %218, %270 : vector<2x256xf32>
    %272 = vector.broadcast %268 : f32 to vector<2x256xf32>
    %273 = arith.mulf %21, %272 : vector<2x256xf32>
    %274 = arith.addf %271, %273 : vector<2x256xf32>
    %c27 = arith.constant 27 : index
    %275 = memref.load %arg1[%c27] : memref<98xf32, #tpu.memory_space<smem>>
    %c76 = arith.constant 76 : index
    %276 = memref.load %arg1[%c76] : memref<98xf32, #tpu.memory_space<smem>>
    %277 = vector.broadcast %275 : f32 to vector<2x256xf32>
    %278 = arith.mulf %20, %277 : vector<2x256xf32>
    %279 = arith.addf %226, %278 : vector<2x256xf32>
    %280 = vector.broadcast %276 : f32 to vector<2x256xf32>
    %281 = arith.mulf %21, %280 : vector<2x256xf32>
    %282 = arith.addf %279, %281 : vector<2x256xf32>
    %c240_i32 = arith.constant 240 : i32
    %283 = tpu.dynamic_rotate %20 by %c240_i32 dim 1 : vector<2x256xf32>, i32 -> vector<2x256xf32>
    %c240_i32_57 = arith.constant 240 : i32
    %284 = tpu.dynamic_rotate %21 by %c240_i32_57 dim 1 : vector<2x256xf32>, i32 -> vector<2x256xf32>
    %285 = vector.broadcast %25 : vector<1x256xf32> to vector<2x256xf32>
    %286 = arith.mulf %283, %285 : vector<2x256xf32>
    %287 = vector.broadcast %25 : vector<1x256xf32> to vector<2x256xf32>
    %288 = arith.mulf %284, %287 : vector<2x256xf32>
    %c28 = arith.constant 28 : index
    %289 = memref.load %arg1[%c28] : memref<98xf32, #tpu.memory_space<smem>>
    %c77 = arith.constant 77 : index
    %290 = memref.load %arg1[%c77] : memref<98xf32, #tpu.memory_space<smem>>
    %291 = vector.broadcast %289 : f32 to vector<2x256xf32>
    %292 = arith.mulf %286, %291 : vector<2x256xf32>
    %293 = arith.addf %234, %292 : vector<2x256xf32>
    %294 = vector.broadcast %290 : f32 to vector<2x256xf32>
    %295 = arith.mulf %288, %294 : vector<2x256xf32>
    %296 = arith.addf %293, %295 : vector<2x256xf32>
    %c29 = arith.constant 29 : index
    %297 = memref.load %arg1[%c29] : memref<98xf32, #tpu.memory_space<smem>>
    %c78 = arith.constant 78 : index
    %298 = memref.load %arg1[%c78] : memref<98xf32, #tpu.memory_space<smem>>
    %299 = vector.broadcast %297 : f32 to vector<2x256xf32>
    %300 = arith.mulf %286, %299 : vector<2x256xf32>
    %301 = arith.addf %242, %300 : vector<2x256xf32>
    %302 = vector.broadcast %298 : f32 to vector<2x256xf32>
    %303 = arith.mulf %288, %302 : vector<2x256xf32>
    %304 = arith.addf %301, %303 : vector<2x256xf32>
    %c30 = arith.constant 30 : index
    %305 = memref.load %arg1[%c30] : memref<98xf32, #tpu.memory_space<smem>>
    %c79 = arith.constant 79 : index
    %306 = memref.load %arg1[%c79] : memref<98xf32, #tpu.memory_space<smem>>
    %307 = vector.broadcast %305 : f32 to vector<2x256xf32>
    %308 = arith.mulf %286, %307 : vector<2x256xf32>
    %309 = arith.addf %250, %308 : vector<2x256xf32>
    %310 = vector.broadcast %306 : f32 to vector<2x256xf32>
    %311 = arith.mulf %288, %310 : vector<2x256xf32>
    %312 = arith.addf %309, %311 : vector<2x256xf32>
    %c31 = arith.constant 31 : index
    %313 = memref.load %arg1[%c31] : memref<98xf32, #tpu.memory_space<smem>>
    %c80 = arith.constant 80 : index
    %314 = memref.load %arg1[%c80] : memref<98xf32, #tpu.memory_space<smem>>
    %315 = vector.broadcast %313 : f32 to vector<2x256xf32>
    %316 = arith.mulf %286, %315 : vector<2x256xf32>
    %317 = arith.addf %258, %316 : vector<2x256xf32>
    %318 = vector.broadcast %314 : f32 to vector<2x256xf32>
    %319 = arith.mulf %288, %318 : vector<2x256xf32>
    %320 = arith.addf %317, %319 : vector<2x256xf32>
    %c32 = arith.constant 32 : index
    %321 = memref.load %arg1[%c32] : memref<98xf32, #tpu.memory_space<smem>>
    %c81 = arith.constant 81 : index
    %322 = memref.load %arg1[%c81] : memref<98xf32, #tpu.memory_space<smem>>
    %323 = vector.broadcast %321 : f32 to vector<2x256xf32>
    %324 = arith.mulf %286, %323 : vector<2x256xf32>
    %325 = arith.addf %266, %324 : vector<2x256xf32>
    %326 = vector.broadcast %322 : f32 to vector<2x256xf32>
    %327 = arith.mulf %288, %326 : vector<2x256xf32>
    %328 = arith.addf %325, %327 : vector<2x256xf32>
    %c33 = arith.constant 33 : index
    %329 = memref.load %arg1[%c33] : memref<98xf32, #tpu.memory_space<smem>>
    %c82 = arith.constant 82 : index
    %330 = memref.load %arg1[%c82] : memref<98xf32, #tpu.memory_space<smem>>
    %331 = vector.broadcast %329 : f32 to vector<2x256xf32>
    %332 = arith.mulf %286, %331 : vector<2x256xf32>
    %333 = arith.addf %274, %332 : vector<2x256xf32>
    %334 = vector.broadcast %330 : f32 to vector<2x256xf32>
    %335 = arith.mulf %288, %334 : vector<2x256xf32>
    %336 = arith.addf %333, %335 : vector<2x256xf32>
    %c34 = arith.constant 34 : index
    %337 = memref.load %arg1[%c34] : memref<98xf32, #tpu.memory_space<smem>>
    %c83 = arith.constant 83 : index
    %338 = memref.load %arg1[%c83] : memref<98xf32, #tpu.memory_space<smem>>
    %339 = vector.broadcast %337 : f32 to vector<2x256xf32>
    %340 = arith.mulf %286, %339 : vector<2x256xf32>
    %341 = arith.addf %282, %340 : vector<2x256xf32>
    %342 = vector.broadcast %338 : f32 to vector<2x256xf32>
    %343 = arith.mulf %288, %342 : vector<2x256xf32>
    %344 = arith.addf %341, %343 : vector<2x256xf32>
    %c224_i32 = arith.constant 224 : i32
    %345 = tpu.dynamic_rotate %20 by %c224_i32 dim 1 : vector<2x256xf32>, i32 -> vector<2x256xf32>
    %c224_i32_58 = arith.constant 224 : i32
    %346 = tpu.dynamic_rotate %21 by %c224_i32_58 dim 1 : vector<2x256xf32>, i32 -> vector<2x256xf32>
    %347 = vector.broadcast %26 : vector<1x256xf32> to vector<2x256xf32>
    %348 = arith.mulf %345, %347 : vector<2x256xf32>
    %349 = vector.broadcast %26 : vector<1x256xf32> to vector<2x256xf32>
    %350 = arith.mulf %346, %349 : vector<2x256xf32>
    %c35 = arith.constant 35 : index
    %351 = memref.load %arg1[%c35] : memref<98xf32, #tpu.memory_space<smem>>
    %c84 = arith.constant 84 : index
    %352 = memref.load %arg1[%c84] : memref<98xf32, #tpu.memory_space<smem>>
    %353 = vector.broadcast %351 : f32 to vector<2x256xf32>
    %354 = arith.mulf %348, %353 : vector<2x256xf32>
    %355 = arith.addf %296, %354 : vector<2x256xf32>
    %356 = vector.broadcast %352 : f32 to vector<2x256xf32>
    %357 = arith.mulf %350, %356 : vector<2x256xf32>
    %358 = arith.addf %355, %357 : vector<2x256xf32>
    %c36 = arith.constant 36 : index
    %359 = memref.load %arg1[%c36] : memref<98xf32, #tpu.memory_space<smem>>
    %c85 = arith.constant 85 : index
    %360 = memref.load %arg1[%c85] : memref<98xf32, #tpu.memory_space<smem>>
    %361 = vector.broadcast %359 : f32 to vector<2x256xf32>
    %362 = arith.mulf %348, %361 : vector<2x256xf32>
    %363 = arith.addf %304, %362 : vector<2x256xf32>
    %364 = vector.broadcast %360 : f32 to vector<2x256xf32>
    %365 = arith.mulf %350, %364 : vector<2x256xf32>
    %366 = arith.addf %363, %365 : vector<2x256xf32>
    %c37 = arith.constant 37 : index
    %367 = memref.load %arg1[%c37] : memref<98xf32, #tpu.memory_space<smem>>
    %c86 = arith.constant 86 : index
    %368 = memref.load %arg1[%c86] : memref<98xf32, #tpu.memory_space<smem>>
    %369 = vector.broadcast %367 : f32 to vector<2x256xf32>
    %370 = arith.mulf %348, %369 : vector<2x256xf32>
    %371 = arith.addf %312, %370 : vector<2x256xf32>
    %372 = vector.broadcast %368 : f32 to vector<2x256xf32>
    %373 = arith.mulf %350, %372 : vector<2x256xf32>
    %374 = arith.addf %371, %373 : vector<2x256xf32>
    %c38 = arith.constant 38 : index
    %375 = memref.load %arg1[%c38] : memref<98xf32, #tpu.memory_space<smem>>
    %c87 = arith.constant 87 : index
    %376 = memref.load %arg1[%c87] : memref<98xf32, #tpu.memory_space<smem>>
    %377 = vector.broadcast %375 : f32 to vector<2x256xf32>
    %378 = arith.mulf %348, %377 : vector<2x256xf32>
    %379 = arith.addf %320, %378 : vector<2x256xf32>
    %380 = vector.broadcast %376 : f32 to vector<2x256xf32>
    %381 = arith.mulf %350, %380 : vector<2x256xf32>
    %382 = arith.addf %379, %381 : vector<2x256xf32>
    %c39 = arith.constant 39 : index
    %383 = memref.load %arg1[%c39] : memref<98xf32, #tpu.memory_space<smem>>
    %c88 = arith.constant 88 : index
    %384 = memref.load %arg1[%c88] : memref<98xf32, #tpu.memory_space<smem>>
    %385 = vector.broadcast %383 : f32 to vector<2x256xf32>
    %386 = arith.mulf %348, %385 : vector<2x256xf32>
    %387 = arith.addf %328, %386 : vector<2x256xf32>
    %388 = vector.broadcast %384 : f32 to vector<2x256xf32>
    %389 = arith.mulf %350, %388 : vector<2x256xf32>
    %390 = arith.addf %387, %389 : vector<2x256xf32>
    %c40 = arith.constant 40 : index
    %391 = memref.load %arg1[%c40] : memref<98xf32, #tpu.memory_space<smem>>
    %c89 = arith.constant 89 : index
    %392 = memref.load %arg1[%c89] : memref<98xf32, #tpu.memory_space<smem>>
    %393 = vector.broadcast %391 : f32 to vector<2x256xf32>
    %394 = arith.mulf %348, %393 : vector<2x256xf32>
    %395 = arith.addf %336, %394 : vector<2x256xf32>
    %396 = vector.broadcast %392 : f32 to vector<2x256xf32>
    %397 = arith.mulf %350, %396 : vector<2x256xf32>
    %398 = arith.addf %395, %397 : vector<2x256xf32>
    %c41 = arith.constant 41 : index
    %399 = memref.load %arg1[%c41] : memref<98xf32, #tpu.memory_space<smem>>
    %c90 = arith.constant 90 : index
    %400 = memref.load %arg1[%c90] : memref<98xf32, #tpu.memory_space<smem>>
    %401 = vector.broadcast %399 : f32 to vector<2x256xf32>
    %402 = arith.mulf %348, %401 : vector<2x256xf32>
    %403 = arith.addf %344, %402 : vector<2x256xf32>
    %404 = vector.broadcast %400 : f32 to vector<2x256xf32>
    %405 = arith.mulf %350, %404 : vector<2x256xf32>
    %406 = arith.addf %403, %405 : vector<2x256xf32>
    %c208_i32 = arith.constant 208 : i32
    %407 = tpu.dynamic_rotate %20 by %c208_i32 dim 1 : vector<2x256xf32>, i32 -> vector<2x256xf32>
    %c208_i32_59 = arith.constant 208 : i32
    %408 = tpu.dynamic_rotate %21 by %c208_i32_59 dim 1 : vector<2x256xf32>, i32 -> vector<2x256xf32>
    %409 = vector.broadcast %27 : vector<1x256xf32> to vector<2x256xf32>
    %410 = arith.mulf %407, %409 : vector<2x256xf32>
    %411 = vector.broadcast %27 : vector<1x256xf32> to vector<2x256xf32>
    %412 = arith.mulf %408, %411 : vector<2x256xf32>
    %c42 = arith.constant 42 : index
    %413 = memref.load %arg1[%c42] : memref<98xf32, #tpu.memory_space<smem>>
    %c91 = arith.constant 91 : index
    %414 = memref.load %arg1[%c91] : memref<98xf32, #tpu.memory_space<smem>>
    %415 = vector.broadcast %413 : f32 to vector<2x256xf32>
    %416 = arith.mulf %410, %415 : vector<2x256xf32>
    %417 = arith.addf %358, %416 : vector<2x256xf32>
    %418 = vector.broadcast %414 : f32 to vector<2x256xf32>
    %419 = arith.mulf %412, %418 : vector<2x256xf32>
    %420 = arith.addf %417, %419 : vector<2x256xf32>
    %c43 = arith.constant 43 : index
    %421 = memref.load %arg1[%c43] : memref<98xf32, #tpu.memory_space<smem>>
    %c92 = arith.constant 92 : index
    %422 = memref.load %arg1[%c92] : memref<98xf32, #tpu.memory_space<smem>>
    %423 = vector.broadcast %421 : f32 to vector<2x256xf32>
    %424 = arith.mulf %410, %423 : vector<2x256xf32>
    %425 = arith.addf %366, %424 : vector<2x256xf32>
    %426 = vector.broadcast %422 : f32 to vector<2x256xf32>
    %427 = arith.mulf %412, %426 : vector<2x256xf32>
    %428 = arith.addf %425, %427 : vector<2x256xf32>
    %c44 = arith.constant 44 : index
    %429 = memref.load %arg1[%c44] : memref<98xf32, #tpu.memory_space<smem>>
    %c93 = arith.constant 93 : index
    %430 = memref.load %arg1[%c93] : memref<98xf32, #tpu.memory_space<smem>>
    %431 = vector.broadcast %429 : f32 to vector<2x256xf32>
    %432 = arith.mulf %410, %431 : vector<2x256xf32>
    %433 = arith.addf %374, %432 : vector<2x256xf32>
    %434 = vector.broadcast %430 : f32 to vector<2x256xf32>
    %435 = arith.mulf %412, %434 : vector<2x256xf32>
    %436 = arith.addf %433, %435 : vector<2x256xf32>
    %c45 = arith.constant 45 : index
    %437 = memref.load %arg1[%c45] : memref<98xf32, #tpu.memory_space<smem>>
    %c94 = arith.constant 94 : index
    %438 = memref.load %arg1[%c94] : memref<98xf32, #tpu.memory_space<smem>>
    %439 = vector.broadcast %437 : f32 to vector<2x256xf32>
    %440 = arith.mulf %410, %439 : vector<2x256xf32>
    %441 = arith.addf %382, %440 : vector<2x256xf32>
    %442 = vector.broadcast %438 : f32 to vector<2x256xf32>
    %443 = arith.mulf %412, %442 : vector<2x256xf32>
    %444 = arith.addf %441, %443 : vector<2x256xf32>
    %c46 = arith.constant 46 : index
    %445 = memref.load %arg1[%c46] : memref<98xf32, #tpu.memory_space<smem>>
    %c95 = arith.constant 95 : index
    %446 = memref.load %arg1[%c95] : memref<98xf32, #tpu.memory_space<smem>>
    %447 = vector.broadcast %445 : f32 to vector<2x256xf32>
    %448 = arith.mulf %410, %447 : vector<2x256xf32>
    %449 = arith.addf %390, %448 : vector<2x256xf32>
    %450 = vector.broadcast %446 : f32 to vector<2x256xf32>
    %451 = arith.mulf %412, %450 : vector<2x256xf32>
    %452 = arith.addf %449, %451 : vector<2x256xf32>
    %c47 = arith.constant 47 : index
    %453 = memref.load %arg1[%c47] : memref<98xf32, #tpu.memory_space<smem>>
    %c96 = arith.constant 96 : index
    %454 = memref.load %arg1[%c96] : memref<98xf32, #tpu.memory_space<smem>>
    %455 = vector.broadcast %453 : f32 to vector<2x256xf32>
    %456 = arith.mulf %410, %455 : vector<2x256xf32>
    %457 = arith.addf %398, %456 : vector<2x256xf32>
    %458 = vector.broadcast %454 : f32 to vector<2x256xf32>
    %459 = arith.mulf %412, %458 : vector<2x256xf32>
    %460 = arith.addf %457, %459 : vector<2x256xf32>
    %c48 = arith.constant 48 : index
    %461 = memref.load %arg1[%c48] : memref<98xf32, #tpu.memory_space<smem>>
    %c97 = arith.constant 97 : index
    %462 = memref.load %arg1[%c97] : memref<98xf32, #tpu.memory_space<smem>>
    %463 = vector.broadcast %461 : f32 to vector<2x256xf32>
    %464 = arith.mulf %410, %463 : vector<2x256xf32>
    %465 = arith.addf %406, %464 : vector<2x256xf32>
    %466 = vector.broadcast %462 : f32 to vector<2x256xf32>
    %467 = arith.mulf %412, %466 : vector<2x256xf32>
    %468 = arith.addf %465, %467 : vector<2x256xf32>
    %c3_i32 = arith.constant 3 : i32
    %469 = tpu.dynamic_rotate %420 by %c3_i32 dim 1 : vector<2x256xf32>, i32 -> vector<2x256xf32>
    %470 = vector.broadcast %28 : vector<1x256xf32> to vector<2x256xf32>
    %471 = arith.mulf %469, %470 : vector<2x256xf32>
    %c2_i32 = arith.constant 2 : i32
    %472 = tpu.dynamic_rotate %428 by %c2_i32 dim 1 : vector<2x256xf32>, i32 -> vector<2x256xf32>
    %473 = vector.broadcast %29 : vector<1x256xf32> to vector<2x256xf32>
    %474 = arith.mulf %472, %473 : vector<2x256xf32>
    %475 = arith.addf %471, %474 : vector<2x256xf32>
    %c1_i32 = arith.constant 1 : i32
    %476 = tpu.dynamic_rotate %436 by %c1_i32 dim 1 : vector<2x256xf32>, i32 -> vector<2x256xf32>
    %477 = vector.broadcast %30 : vector<1x256xf32> to vector<2x256xf32>
    %478 = arith.mulf %476, %477 : vector<2x256xf32>
    %479 = arith.addf %475, %478 : vector<2x256xf32>
    %480 = arith.addf %479, %444 : vector<2x256xf32>
    %c255_i32 = arith.constant 255 : i32
    %481 = tpu.dynamic_rotate %452 by %c255_i32 dim 1 : vector<2x256xf32>, i32 -> vector<2x256xf32>
    %482 = vector.broadcast %31 : vector<1x256xf32> to vector<2x256xf32>
    %483 = arith.mulf %481, %482 : vector<2x256xf32>
    %484 = arith.addf %480, %483 : vector<2x256xf32>
    %c254_i32 = arith.constant 254 : i32
    %485 = tpu.dynamic_rotate %460 by %c254_i32 dim 1 : vector<2x256xf32>, i32 -> vector<2x256xf32>
    %486 = vector.broadcast %32 : vector<1x256xf32> to vector<2x256xf32>
    %487 = arith.mulf %485, %486 : vector<2x256xf32>
    %488 = arith.addf %484, %487 : vector<2x256xf32>
    %c253_i32 = arith.constant 253 : i32
    %489 = tpu.dynamic_rotate %468 by %c253_i32 dim 1 : vector<2x256xf32>, i32 -> vector<2x256xf32>
    %490 = vector.broadcast %33 : vector<1x256xf32> to vector<2x256xf32>
    %491 = arith.mulf %489, %490 : vector<2x256xf32>
    %492 = arith.addf %488, %491 : vector<2x256xf32>
    %493 = arith.negf %492 : vector<2x256xf32>
    %494 = math.exp %493 : vector<2x256xf32>
    %cst_60 = arith.constant 1.000000e+00 : f32
    %495 = vector.broadcast %cst_60 : f32 to vector<2x256xf32>
    %496 = arith.addf %495, %494 : vector<2x256xf32>
    %497 = arith.divf %495, %496 : vector<2x256xf32>
    %498 = vector.extract_strided_slice %497 {offsets = [0, 0], sizes = [1, 256], strides = [1, 1]} : vector<2x256xf32> to vector<1x256xf32>
    %c0_61 = arith.constant 0 : index
    %c0_62 = arith.constant 0 : index
    %c0_63 = arith.constant 0 : index
    %499 = vector.load %arg5[%c0_61, %c0_62, %c0_63] : memref<2x1x256xf32, #tpu.memory_space<vmem>>, vector<1x1x256xf32>
    %500 = vector.shape_cast %499 : vector<1x1x256xf32> to vector<1x256xf32>
    %501 = vector.shape_cast %498 : vector<1x256xf32> to vector<1x1x256xf32>
    tpu.vector_store %arg5[%c0_61, %c0_62, %c0_63], %501 {strides = array<i32>} : memref<2x1x256xf32, #tpu.memory_space<vmem>>, vector<1x1x256xf32>,
    %502 = vector.extract_strided_slice %497 {offsets = [1, 0], sizes = [1, 256], strides = [1, 1]} : vector<2x256xf32> to vector<1x256xf32>
    %c1_64 = arith.constant 1 : index
    %c0_65 = arith.constant 0 : index
    %c0_66 = arith.constant 0 : index
    %503 = vector.load %arg5[%c1_64, %c0_65, %c0_66] : memref<2x1x256xf32, #tpu.memory_space<vmem>>, vector<1x1x256xf32>
    %504 = vector.shape_cast %503 : vector<1x1x256xf32> to vector<1x256xf32>
    %505 = vector.shape_cast %502 : vector<1x256xf32> to vector<1x1x256xf32>
    tpu.vector_store %arg5[%c1_64, %c0_65, %c0_66], %505 {strides = array<i32>} : memref<2x1x256xf32, #tpu.memory_space<vmem>>, vector<1x1x256xf32>,
    return
  }
  func.func @transform_0(%arg0: i32) -> i32 {
    %c0_i32 = arith.constant 0 : i32
    %c0_i32_0 = arith.constant 0 : i32
    return %c0_i32 : i32
  }
  func.func @transform_1(%arg0: i32) -> (i32, i32) {
    %c0_i32 = arith.constant 0 : i32
    %c0_i32_0 = arith.constant 0 : i32
    %c0_i32_1 = arith.constant 0 : i32
    return %c0_i32, %c0_i32_0 : i32, i32
  }
  func.func @transform_2(%arg0: i32) -> (i32, i32) {
    %c0_i32 = arith.constant 0 : i32
    %c0_i32_0 = arith.constant 0 : i32
    %c0_i32_1 = arith.constant 0 : i32
    return %c0_i32, %c0_i32_0 : i32, i32
  }
  func.func @transform_3(%arg0: i32) -> (i32, i32, i32) {
    %c0_i32 = arith.constant 0 : i32
    %c0_i32_0 = arith.constant 0 : i32
    %c0_i32_1 = arith.constant 0 : i32
    return %arg0, %c0_i32, %c0_i32_0 : i32, i32, i32
  }
  func.func @transform_4(%arg0: i32) -> (i32, i32, i32) {
    %c0_i32 = arith.constant 0 : i32
    %c0_i32_0 = arith.constant 0 : i32
    %c0_i32_1 = arith.constant 0 : i32
    return %arg0, %c0_i32, %c0_i32_0 : i32, i32, i32
  }
}

</mosaic_0001>

<bundles_post_ra>
// kernel: tpu_custom_call.1
= control target key start
LH: loop header
LB: loop body
LE: loop exit
PB: predicated region body
PF: predicated region fallthrough
CT: control target
= control target key end

     0   :  { %s3028_s0 = inlined_call_operand.hbm [shape: f32[98], index: 0, kind: input, shape index: {}]   ;;  %s3029_s1 = inlined_call_operand.hbm [shape: f32[7,256], index: 1, kind: input, shape index: {}]   ;;  %s3030_s2 = inlined_call_operand.hbm [shape: f32[7,256], index: 2, kind: input, shape index: {}]   ;;  %s3031_s3 = inlined_call_operand.hbm [shape: f32[2,4,256], index: 3, kind: input, shape index: {}]   ;;  %s3032_s4 = inlined_call_operand.hbm [shape: f32[2,1,256], index: 4, kind: output, shape index: {}]  }
   0x1   :  { %3164 = sst [smem:[#allocation117_spill]] %s3032_s4 }
   0x2   :  { %9 = vsyncpa [#allocation7], 0 }
   0x3   :  { %10 = vsyncpa [#allocation5], 0 }
   0x4   :  { %11 = vsyncpa [#allocation10], 0 }
   0x5   :  { %12 = vsyncpa [#allocation6], 0  ;;  %s1591_s15 = smov [#allocation9]   ;;  %s1592_s17 = smov [#allocation8]  }
   0x6   :  { %s37_s16 = sshll.u32 %s1591_s15, 4  ;;  %s27_s18 = sshll.u32 %s1592_s17, 4  ;;  %s38_s16 = int_to_ptr.vmem [resolvable:$true] %s37_s16  ;;  %s28_s18 = int_to_ptr.vmem [resolvable:$true] %s27_s18 }
   0x7   :  { %s1485_s21 = scalar_lea.hbm %s3030_s2, 256 }
   0x8   :  { %p1486_p0 = scmp.ne.s32.totalorder %s3030_s2, %s1485_s21  ;;  %p1489_p1 = scmp.lt.u32.totalorder %s1485_s21, %s3030_s2 }
   0xa   :  { %p1491_p2 = pnand %p1489_p1, %p1486_p0 }
   0xc   :  { %1494 = shalt.err (!%p1491_p2)
}
   0xd   :  { %s1495_s26 = scalar_lea.vmem %s38_s16, 256  ;;  %p1500_p4 = scmp.lt.s32.totalorder %s38_s16, %s38_s16 }
   0xe   :  { %p1496_p3 = scmp.ne.s32.totalorder %s38_s16, %s1495_s26  ;;  %p1501_p5 = scmp.lt.s32.totalorder %s1495_s26, %s1495_s26 }
  0x10   :  { %p1502_p6 = por %p1501_p5, %p1500_p4 }
  0x12   :  { %p1503_p7 = pnand %p1502_p6, %p1496_p3 }
  0x14   :  { %1506 = shalt.err (!%p1503_p7)
}
  0x15   :  { %40 = dma.hbm_to_vmem [thread:$0]  %s3030_s2, 256, %s38_s16, [#allocation10]  }
  0x16   :  { %s1507_s5 = scalar_lea.hbm %s3028_s0, 16 }
  0x17   :  { %p1508_p8 = scmp.ne.s32.totalorder %s3028_s0, %s1507_s5  ;;  %p1511_p9 = scmp.lt.u32.totalorder %s1507_s5, %s3028_s0 }
  0x19   :  { %p1513_p10 = pnand %p1511_p9, %p1508_p8 }
  0x1b   :  { %1516 = shalt.err (!%p1513_p10)
}
  0x1c   :  { %s1593_s10 = smov [#allocation4]   ;;  %s1517_s14 = scalar_lea.hbm %s3029_s1, 256 }
  0x1d   :  { %20 = dma.hbm_to_smem %s3028_s0, 16, %s1593_s10, [#allocation7]  }
  0x1e   :  { %p1518_p11 = scmp.ne.s32.totalorder %s3029_s1, %s1517_s14  ;;  %p1521_p12 = scmp.lt.u32.totalorder %s1517_s14, %s3029_s1 }
  0x20   :  { %p1523_p13 = pnand %p1521_p12, %p1518_p11 }
  0x22   :  { %1526 = shalt.err (!%p1523_p13)
}
  0x23   :  { %s1527_s20 = scalar_lea.vmem %s28_s18, 256  ;;  %p1532_p1 = scmp.lt.s32.totalorder %s28_s18, %s28_s18 }
  0x24   :  { %p1528_p0 = scmp.ne.s32.totalorder %s28_s18, %s1527_s20  ;;  %p1533_p2 = scmp.lt.s32.totalorder %s1527_s20, %s1527_s20 }
  0x26   :  { %p1534_p3 = por %p1533_p2, %p1532_p1 }
  0x28   :  { %p1535_p4 = pnand %p1534_p3, %p1528_p0 }
  0x2a   :  { %1538 = shalt.err (!%p1535_p4)
}
  0x2b   :  { %30 = dma.hbm_to_vmem [thread:$0]  %s3029_s1, 256, %s28_s18, [#allocation5]  }
  0x2c   :  { %s1594_s22 = smov [#allocation11]   ;;  %s1539_s26 = scalar_lea.hbm %s3031_s3, 256 }
  0x2d   :  { %s46_s23 = sshll.u32 %s1594_s22, 4  ;;  %p1540_p5 = scmp.ne.s32.totalorder %s3031_s3, %s1539_s26  ;;  %s47_s23 = int_to_ptr.vmem [resolvable:$true] %s46_s23 }
  0x2e   :  { %p1543_p6 = scmp.lt.u32.totalorder %s1539_s26, %s3031_s3 }
  0x30   :  { %p1545_p7 = pnand %p1543_p6, %p1540_p5 }
  0x32   :  { %1548 = shalt.err (!%p1545_p7)
}
  0x33   :  { %s1549_s5 = scalar_lea.vmem %s47_s23, 256  ;;  %p1554_p9 = scmp.lt.s32.totalorder %s47_s23, %s47_s23 }
  0x34   :  { %p1550_p8 = scmp.ne.s32.totalorder %s47_s23, %s1549_s5  ;;  %p1555_p10 = scmp.lt.s32.totalorder %s1549_s5, %s1549_s5 }
  0x36   :  { %p1556_p11 = por %p1555_p10, %p1554_p9 }
  0x38   :  { %p1557_p12 = pnand %p1556_p11, %p1550_p8 }
  0x3a   :  { %1560 = shalt.err (!%p1557_p12)
}
  0x3b   :  { %s1595_s1 = smov 128   ;;  %s1596_s18 = smov 8  }
  0x3c   :  { %52 = dma.hbm_to_vmem [thread:$0]  %s3031_s3, 256, %s47_s23, [#allocation10], %s1595_s1, %s1595_s1, %s1596_s18  }
  0x3d   :  { %1583 = dma.done.wait [#allocation7], 16  }
  0x3e   :  { %1584 = vsyncadd [#allocation7], 4294967280 }
  0x3f   :  { %1585 = dma.done.wait [#allocation5], 256  }
  0x40   :  { %1586 = vsyncadd [#allocation5], 4294967040 }
  0x41   :  { %1587 = dma.done.wait [#allocation10], 512  }
  0x42   :  { %1588 = vsyncadd [#allocation10], 4294966784 }
  0x43   :  { %65 = sfence }
  0x44   :  { %v66_v0 = vld [vmem:[#allocation11] sm:$0xff]  ;;  %vm70_vm0 = vcmask 1043456   ;;  %v144_v1 = vld [vmem:[#allocation11 + $0x8] sm:$0xff]  ;;  %v107_v8 = vlaneseq  ;;  %v1597_v14 = vmov 1966171168   ;;  %v3166_v63 = vmov 0 }
  0x45   :  { %v68_v2 = vcombine.high %v66_v0, %v66_v0  ;;  %v85_v3 = vsel %vm70_vm0, %v66_v0, -inf  ;;  %v146_v4 = vcombine.high %v144_v1, %v144_v1  ;;  %v162_v6 = vsel %vm70_vm0, %v144_v1, -inf  ;;  %s3033_s3 = smov 32   ;;  %s1600_s8 = smov 48  }
  0x46   :  { %v86_v5 = vrot.slane %v85_v3, 4  ;;  %v163_v9 = vrot.slane %v162_v6, 4  ;;  %v105_v15 = vunpack.c.l.s4 %v1597_v14  ;;  %v71_v17 = vsel %vm70_vm0, %v66_v0, 0.0  ;;  %s1601_s9 = smov 16   ;;  %s1602_s10 = smov 112  }
  0x47   :  { %v92_v7 = vsel %vm70_vm0, %v68_v2, -inf  ;;  %v169_v10 = vsel %vm70_vm0, %v146_v4, -inf  ;;  %v72_v21 = vrot.slane %v71_v17, 4  ;;  %v1691_v22 = vshrl.u32 %v107_v8, 7  ;;  %s1603_s11 = smov 96   ;;  %s1604_s12 = smov 80  }
  0x48   :  { %v87_v11 = vmax.f32 %v85_v3, %v86_v5  ;;  %v93_v12 = vrot.slane %v92_v7, 4  ;;  %v170_v13 = vrot.slane %v169_v10, 4  ;;  %v164_v16 = vmax.f32 %v162_v6, %v163_v9  ;;  %s1735_s2 = sld [smem:[#allocation4 + $0x31]]  ;;  %s1737_s13 = sld [smem:[#allocation4 + $0x32]] }
  0x49   :  { %v78_v24 = vsel %vm70_vm0, %v68_v2, 0.0  ;;  %v148_v25 = vsel %vm70_vm0, %v144_v1, 0.0  ;;  %v73_v29 = vadd.f32 %v72_v21, %v71_v17  ;;  %v106_v30 = vunpack.c.0.s8 %v105_v15  ;;  %s1739_s14 = sld [smem:[#allocation4 + $0x33]]  ;;  %s1741_s15 = sld [smem:[#allocation4 + $0x34]] }
  0x4a   :  { %v88_v18 = vrot.slane %v87_v11, 2  ;;  %v94_v19 = vmax.f32 %v92_v7, %v93_v12  ;;  %v171_v20 = vmax.f32 %v169_v10, %v170_v13  ;;  %v165_v23 = vrot.slane %v164_v16, 2  ;;  %s1743_s16 = sld [smem:[#allocation4 + $0x35]]  ;;  %s1745_s17 = sld [smem:[#allocation4 + $0x36]] }
  0x4b   :  { %v79_v32 = vrot.slane %v78_v24, 4  ;;  %v149_v33 = vrot.slane %v148_v25, 4  ;;  %v74_v37 = vrot.slane %v73_v29, 2  ;;  %v155_v41 = vsel %vm70_vm0, %v146_v4, 0.0  ;;  %s1747_s19 = sld [smem:[#allocation4 + $0x37]]  ;;  %s1749_s20 = sld [smem:[#allocation4 + $0x3b]] }
  0x4c   :  { %v89_v26 = vmax.f32 %v87_v11, %v88_v18  ;;  %v95_v27 = vrot.slane %v94_v19, 2  ;;  %v172_v28 = vrot.slane %v171_v20, 2  ;;  %v166_v31 = vmax.f32 %v164_v16, %v165_v23  ;;  %s1751_s0 = sld [smem:[#allocation4 + $0x38]]  ;;  %s1753_s21 = sld [smem:[#allocation4 + $0x7]] }
  0x4d   :  { %v80_v39 = vadd.f32 %v79_v32, %v78_v24  ;;  %v150_v40 = vadd.f32 %v149_v33, %v148_v25  ;;  %v75_v45 = vadd.f32 %v74_v37, %v73_v29  ;;  %v156_v49 = vrot.slane %v155_v41, 4  ;;  %s1755_s22 = sld [smem:[#allocation4 + $0x8]]  ;;  %s1757_s23 = sld [smem:[#allocation4 + $0x9]] }
  0x4e   :  { %v90_v34 = vrot.slane %v89_v26, 1  ;;  %v96_v35 = vmax.f32 %v94_v19, %v95_v27  ;;  %v173_v36 = vmax.f32 %v171_v20, %v172_v28  ;;  %v167_v38 = vrot.slane %v166_v31, 1  ;;  %s1759_s24 = sld [smem:[#allocation4 + $0xa]]  ;;  %s1761_s25 = sld [smem:[#allocation4 + $0xb]] }
  0x4f   :  { %v81_v47 = vrot.slane %v80_v39, 2  ;;  %v151_v48 = vrot.slane %v150_v40, 2  ;;  %v1697_v51 = vsub.s32 %v106_v30, %v1691_v22  ;;  %v76_v53 = vrot.slane %v75_v45, 1  ;;  %3169 = sst [smem:[#allocation19_spill]] %s1739_s14  ;;  %s1763_s26 = sld [smem:[#allocation4 + $0xc]] }
  0x50   :  { %v91_v42 = vmax.f32 %v89_v26, %v90_v34  ;;  %v97_v43 = vrot.slane %v96_v35, 1  ;;  %v174_v44 = vrot.slane %v173_v36, 1  ;;  %v168_v46 = vmax.f32 %v166_v31, %v167_v38  ;;  %3170 = sst [smem:[#allocation20_spill]] %s1741_s15  ;;  %s1765_s27 = sld [smem:[#allocation4 + $0xd]] }
  0x51   :  { %3165 = vst [vmem:[#allocation17_spill] sm:$0xff] %v1697_v51  ;;  %v82_v54 = vadd.f32 %v81_v47, %v80_v39  ;;  %v152_v55 = vadd.f32 %v151_v48, %v150_v40  ;;  %v157_v56 = vadd.f32 %v156_v49, %v155_v41  ;;  %v77_v59 = vadd.f32 %v76_v53, %v75_v45  ;;  %3171 = sst [smem:[#allocation21_spill]] %s1743_s16  ;;  %s1767_s28 = sld [smem:[#allocation4]]  ;;  %v220_v31 = vld [vmem:[#allocation8] ss:$8 sm:$0x3] }
  0x52   :  { %v98_v50 = vmax.f32 %v96_v35, %v97_v43  ;;  %v175_v52 = vmax.f32 %v173_v36, %v174_v44  ;;  %vm1700_vm1 = vcmp.lt.s32.totalorder %v107_v8, 256  ;;  %v1598_v2 = vmov 1983009808   ;;  %3172 = sst [smem:[#allocation22_spill]] %s1745_s17  ;;  %s1769_s29 = sld [smem:[#allocation4 + $0x1]] }
  0x53   :  { %v83_v60 = vrot.slane %v82_v54, 1  ;;  %v153_v61 = vrot.slane %v152_v55, 1  ;;  %v158_v62 = vrot.slane %v157_v56, 2  ;;  %v3167_v63 = vsel %vm1700_vm1, 4294967295, %v3166_v63  ;;  %3173 = sst [smem:[#allocation23_spill]] %s1747_s19  ;;  %s1771_s30 = sld [smem:[#allocation4 + $0x2]] }
  0x54   :  { %v126_v57 = vcombine.low %v91_v42, %v98_v50  ;;  %v200_v58 = vcombine.low %v168_v46, %v175_v52  ;;  %3168 = vst [vmem:[#allocation18_spill] sm:$0xff] %v3167_v63  ;;  %v244_v3 = vunpack.c.l.s4 %v1598_v2  ;;  %v99_v5 = vmul.f32 0.25, %v77_v59  ;;  %3174 = sst [smem:[#allocation24_spill]] %s1749_s20  ;;  %s1773_s5 = sld [smem:[#allocation4 + $0x3]] }
  0x55   :  { %v84_v4 = vadd.f32 %v83_v60, %v82_v54  ;;  %v154_v6 = vadd.f32 %v153_v61, %v152_v55  ;;  %v159_v7 = vadd.f32 %v158_v62, %v157_v56  ;;  %3175 = sst [smem:[#allocation25_spill]] %s1753_s21  ;;  %s1775_s1 = sld [smem:[#allocation4 + $0x4]]  ;;  %v1786_v32 = vsub.s32 0, %v1691_v22  ;;  %v222_v34 = vld [vmem:[#allocation8 + $0x1] ss:$8 sm:$0x3] }
  0x56   :  { %v133_v0 = vrot.slane %v126_v57, %v1697_v51  ;;  %v207_v1 = vrot.slane %v200_v58, %v1697_v51  ;;  %v245_v13 = vunpack.c.0.s8 %v244_v3  ;;  %3176 = sst [smem:[#allocation26_spill]] %s1755_s22  ;;  %s1777_s18 = sld [smem:[#allocation4 + $0x5]]  ;;  %v1789_v33 = vsub.s32 1, %v1691_v22  ;;  %v224_v35 = vld [vmem:[#allocation8 + $0x2] ss:$8 sm:$0x3] }
  0x57   :  { %v100_v11 = vmul.f32 0.25, %v84_v4  ;;  %v160_v12 = vrot.slane %v159_v7, 1  ;;  %v176_v16 = vmul.f32 0.25, %v154_v6  ;;  %3177 = sst [smem:[#allocation27_spill]] %s1757_s23  ;;  %s1779_s6 = sld [smem:[#allocation4 + $0x6]]  ;;  %3190 = vst [vmem:[#allocation40_spill] sm:$0xff] %v1786_v32  ;;  %v1811_v36 = vrot.slane %v220_v31, %v1786_v32 }
  0x58   :  { %v140_v9 = vrot.slane %v133_v0, %v1697_v51  ;;  %v214_v10 = vrot.slane %v207_v1, %v1697_v51  ;;  %v1714_v19 = vsub.s32 %v245_v13, %v1691_v22  ;;  %3178 = sst [smem:[#allocation28_spill]] %s1759_s24  ;;  %s1781_s7 = sld [smem:[#allocation4 + $0x3f]]  ;;  %3191 = vst [vmem:[#allocation41_spill] sm:$0xff] %v1789_v33  ;;  %v1804_v22 = vand.u32 127, %v107_v8 }
  0x59   :  { %v103_v14 = vcombine.low %v99_v5, %v100_v11  ;;  %v161_v15 = vadd.f32 %v160_v12, %v159_v7  ;;  %3179 = sst [smem:[#allocation29_spill]] %s1761_s25  ;;  %s1801_s4 = sld [smem:[#allocation4 + $0x47]]  ;;  %v1814_v37 = vrot.slane %v220_v31, %v1789_v33  ;;  %v301_v38 = vstv %s1735_s2  ;;  %v226_v59 = vld [vmem:[#allocation8 + $0x4] ss:$8 sm:$0x3] }
  0x5a   :  { %142 = vst.msk [vmem:[#allocation3] ss:$2 sm:$0x3] %vm1700_vm1, %v140_v9  ;;  %217 = vst.msk [vmem:[#allocation3 + $0x1] ss:$2 sm:$0x3] %vm1700_vm1, %v214_v10  ;;  %v313_v39 = vstv %s1737_s13  ;;  %v325_v8 = vstv %s1739_s14  ;;  %v337_v40 = vstv %s1741_s15  ;;  %v349_v41 = vstv %s1743_s16 }
  0x5b   :  { %v110_v17 = vrot.slane %v103_v14, %v1697_v51  ;;  %v177_v18 = vmul.f32 0.25, %v161_v15  ;;  %3180 = sst [smem:[#allocation30_spill]] %s1763_s26  ;;  %v1826_v42 = vrot.slane %v222_v34, %v1786_v32  ;;  %v361_v43 = vstv %s1745_s17  ;;  %s1840_s15 = sld [smem:[#allocation4 + $0x4e]]  ;;  %v228_v0 = vld [vmem:[#allocation8 + $0x5] ss:$8 sm:$0x3] }
  0x5c   :  { %3181 = sst [smem:[#allocation31_spill]] %s1765_s27  ;;  %v373_v44 = vstv %s1747_s19  ;;  %v1835_v45 = vrot.slane %v222_v34, %v1789_v33  ;;  %v449_v46 = vstv %s1749_s20  ;;  %s1838_s16 = sld [smem:[#allocation4 + $0x23]]  ;;  %v1843_v47 = vrot.slane %v224_v35, %v1786_v32  ;;  %v230_v11 = vld [vmem:[#allocation8 + $0x6] ss:$8 sm:$0x3] }
  0x5d   :  { %v117_v20 = vrot.slane %v110_v17, %v1697_v51  ;;  %v180_v21 = vcombine.low %v176_v16, %v177_v18  ;;  %3182 = sst [smem:[#allocation32_spill]] %s1767_s28  ;;  %v1846_v48 = vrot.slane %v224_v35, %v1789_v33  ;;  %v413_v49 = vstv %s1751_s0  ;;  %s1850_s19 = sld [smem:[#allocation4 + $0x54]] }
  0x5e   :  { %3183 = sst [smem:[#allocation33_spill]] %s1769_s29  ;;  %s1852_s20 = sld [smem:[#allocation4 + $0x17]]  ;;  %v1904_v18 = vrot.slane %v226_v59, %v1786_v32  ;;  %v1941_v35 = vrot.slane %v230_v11, %v1786_v32  ;;  %vm259_vm2 = vcmp.lt.s32.totalorder %v1804_v22, 48  ;;  %vm382_vm3 = vcmp.lt.s32.totalorder %v1804_v22, 32 }
  0x5f   :  { %123 = vst.msk [vmem:[#allocation2] ss:$2 sm:$0x3] %vm1700_vm1, %v117_v20  ;;  %v187_v24 = vrot.slane %v180_v21, %v1697_v51  ;;  %3184 = sst [smem:[#allocation34_spill]] %s1771_s30  ;;  %s1858_s17 = sld [smem:[#allocation4 + $0x48]]  ;;  %v651_v2 = vstv %s1801_s4  ;;  %v1907_v20 = vrot.slane %v226_v59, %v1789_v33  ;;  %vm494_vm4 = vcmp.lt.s32.totalorder %v1804_v22, 16 }
  0x60   :  { %3185 = sst [smem:[#allocation35_spill]] %s1773_s5  ;;  %s1860_s14 = sld [smem:[#allocation4 + $0x3c]]  ;;  %vm830_vm5 = vcmp.lt.s32.totalorder %v1804_v22, 112  ;;  %vm942_vm6 = vcmp.lt.s32.totalorder %v1804_v22, 96  ;;  %vm1054_vm7 = vcmp.lt.s32.totalorder %v1804_v22, 80  ;;  %vm1186_vm8 = vcmp.lt.s32.totalorder %v1804_v22, 2 }
  0x61   :  { %v1717_v23 = vld [vmem:[#allocation3] sm:$0xf]  ;;  %v194_v26 = vrot.slane %v187_v24, %v1697_v51  ;;  %3186 = sst [smem:[#allocation36_spill]] %s1775_s1  ;;  %s1868_s22 = sld [smem:[#allocation4 + $0x1d]]  ;;  %v1917_v24 = vrot.slane %v228_v0, %v1786_v32  ;;  %vm1166_vm9 = vcmp.lt.s32.totalorder %v1804_v22, 3  ;;  %vm1208_vm10 = vcmp.lt.s32.totalorder %v1804_v22, 1 }
  0x62   :  { %v269_v25 = vrot.slane %v1717_v23, %v1714_v19  ;;  %3187 = sst [smem:[#allocation37_spill]] %s1777_s18  ;;  %s1874_s24 = sld [smem:[#allocation4 + $0x24]]  ;;  %v652_v16 = vmul.f32 %v651_v2, %v1717_v23  ;;  %vm1232_vm11 = vcmp.lt.s32.totalorder %v1804_v22, 127  ;;  %vm1254_vm12 = vcmp.lt.s32.totalorder %v1804_v22, 126 }
  0x63   :  { %197 = vst.msk [vmem:[#allocation2 + $0x1] ss:$2 sm:$0x3] %vm1700_vm1, %v194_v26  ;;  %3188 = sst [smem:[#allocation38_spill]] %s1779_s6  ;;  %s1808_s6 = sld [smem:[#allocation4 + $0x3a]]  ;;  %vm1276_vm13 = vcmp.lt.s32.totalorder %v1804_v22, 125 }
  0x64   :  { %385 = vrot.lane.b32.xlu0 %v269_v25, %s3033_s3  ;;  %273 = vrot.lane.b32.xlu1 %v269_v25, %s1600_s8  ;;  %v270_v27 = vcombine.high %v269_v25, %v269_v25  ;;  %3189 = sst [smem:[#allocation39_spill]] %s1781_s7  ;;  %s1806_s7 = sld [smem:[#allocation4 + $0xe]]  ;;  %v1948_v59 = vrot.slane %v652_v16, %v1714_v19 }
  0x65   :  { %3201 = sst [smem:[#allocation51_spill]] %s1838_s16  ;;  %s1876_s26 = sld [smem:[#allocation4 + $0x43]]  ;;  %v683_v34 = vstv %s1858_s17 }
  0x66   :  { %3202 = sst [smem:[#allocation52_spill]] %s1840_s15  ;;  %s1882_s21 = sld [smem:[#allocation4 + $0x55]] }
  0x67   :  { %3203 = sst [smem:[#allocation53_spill]] %s1850_s19  ;;  %s1884_s27 = sld [smem:[#allocation4 + $0x19]] }
  0x68   :  { %497 = vrot.lane.b32.xlu0 %v269_v25, %s1601_s9  ;;  %275 = vrot.lane.b32.xlu1 %v270_v27, %s1600_s8  ;;  %3205 = sst [smem:[#allocation55_spill]] %s1868_s22  ;;  %s1889_s4 = sld [smem:[#allocation4 + $0x5b]] }
  0x69   :  { %3196 = sst [smem:[#allocation46_spill]] %s1808_s6  ;;  %s1828_s6 = sld [smem:[#allocation4 + $0x1c]] }
  0x6a   :  { %v1729_v28 = vld [vmem:[#allocation2] sm:$0xf]  ;;  %3195 = sst [smem:[#allocation45_spill]] %s1806_s7  ;;  %s1830_s7 = sld [smem:[#allocation4 + $0x41]] }
  0x6b   :  { %v249_v29 = vrot.slane %v1729_v28, %v1714_v19  ;;  %3208 = sst [smem:[#allocation56_spill]] %s1874_s24  ;;  %s1892_s28 = sld [smem:[#allocation4 + $0x10]] }
  0x6c   :  { %387 = vrot.lane.b32.xlu1 %v270_v27, %s3033_s3  ;;  %3211 = sst [smem:[#allocation57_spill]] %s1882_s21  ;;  %s1898_s29 = sld [smem:[#allocation4 + $0x2b]] }
  0x6d   :  { %253 = vrot.lane.b32.xlu0 %v249_v29, %s1600_s8  ;;  %v250_v30 = vcombine.high %v249_v29, %v249_v29  ;;  %s1900_s1 = sld [smem:[#allocation4 + $0x4a]]  ;;  %s1912_s23 = sld [smem:[#allocation4 + $0x4f]]  ;;  %v732_v16 = vstv %s1884_s27 }
  0x6e   :  { %3212 = sst [smem:[#allocation58_spill]] %s1889_s4  ;;  %s1928_s25 = sld [smem:[#allocation4 + $0x1a]] }
  0x6f   :  { %3199 = sst [smem:[#allocation49_spill]] %s1828_s6  ;;  %s1914_s18 = sld [smem:[#allocation4 + $0x3d]] }
  0x70   :  { %499 = vrot.lane.b32.xlu1 %v270_v27, %s1601_s9  ;;  %3200 = sst [smem:[#allocation50_spill]] %s1830_s7  ;;  %s1952_s17 = sld [smem:[#allocation4 + $0x12]] }
  0x71   :  { %378 = vrot.lane.b32.xlu0 %v249_v29, %s3033_s3  ;;  %3213 = sst [smem:[#allocation59_spill]] %s1892_s28  ;;  %s1959_s30 = sld [smem:[#allocation4 + $0x25]] }
  0x72   :  { %3215 = sst [smem:[#allocation60_spill]] %s1898_s29  ;;  %s1968_s5 = sld [smem:[#allocation4 + $0x51]] }
  0x73   :  { %3217 = sst [smem:[#allocation61_spill]] %s1912_s23  ;;  %s1977_s7 = sld [smem:[#allocation4 + $0x3e]]  ;;  %v747_v17 = vstv %s1900_s1 }
  0x74   :  { %835 = vrot.lane.b32.xlu1 %v270_v27, %s1602_s10  ;;  %s1979_s6 = sld [smem:[#allocation4 + $0x4c]]  ;;  %s1988_s19 = sld [smem:[#allocation4 + $0x20]] }
  0x75   :  { %490 = vrot.lane.b32.xlu0 %v249_v29, %s1601_s9  ;;  %s1984_s27 = sld [smem:[#allocation4 + $0x2c]]  ;;  %s1996_s15 = sld [smem:[#allocation4 + $0x45]] }
  0x76   :  { %3219 = sst [smem:[#allocation63_spill]] %s1952_s17  ;;  %s1998_s22 = sld [smem:[#allocation4 + $0x18]] }
  0x77   :  { %3220 = sst [smem:[#allocation64_spill]] %s1959_s30  ;;  %s2005_s1 = sld [smem:[#allocation4 + $0x5d]] }
  0x78   :  { %380 = vrot.lane.b32.xlu1 %v250_v30, %s3033_s3  ;;  %s1799_s3 = sld [smem:[#allocation4 + $0x11]]  ;;  %3222 = sst [smem:[#allocation66_spill]] %s1968_s5 }
  0x79   :  { %255 = vrot.lane.b32.xlu0 %v250_v30, %s1600_s8  ;;  %s1783_s8 = sld [smem:[#allocation4 + $0x15]]  ;;  %s2014_s24 = sld [smem:[#allocation4 + $0x27]] }
  0x7a   :  { %3224 = sst [smem:[#allocation68_spill]] %s1988_s19  ;;  %s2016_s21 = sld [smem:[#allocation4 + $0x58]]  ;;  %v811_v58 = vstv %s1979_s6 }
  0x7b   :  { %3223 = sst [smem:[#allocation67_spill]] %s1984_s27  ;;  %s2029_s28 = sld [smem:[#allocation4 + $0x52]]  ;;  %v812_v3 = vmul.f32 %v811_v58, %v1717_v23 }
  0x7c   :  { %492 = vrot.lane.b32.xlu1 %v250_v30, %s1601_s9  ;;  %s1791_s9 = sld [smem:[#allocation4 + $0x46]]  ;;  %s2040_s23 = sld [smem:[#allocation4 + $0x49]] }
  0x7d   :  { %826 = vrot.lane.b32.xlu0 %v249_v29, %s1602_s10  ;;  %3225 = sst [smem:[#allocation69_spill]] %s2005_s1  ;;  %s2048_s29 = sld [smem:[#allocation4 + $0x14]]  ;;  %v2127_v53 = vrot.slane %v812_v3, %v1714_v19 }
  0x7e   :  { %3194 = sst [smem:[#allocation44_spill]] %s1799_s3  ;;  %s1818_s3 = sld [smem:[#allocation4 + $0x4d]] }
  0x7f   :  { %v604_v50 = vstv %s1783_s8  ;;  %s1865_s8 = sld [smem:[#allocation4 + $0x2a]]  ;;  %s2056_s4 = sld [smem:[#allocation4 + $0x28]]  ;;  %3236 = vst [vmem:[#allocation80_spill] sm:$0xff] %v2127_v53 }
  0x80   :  { %947 = vrot.lane.b32.xlu1 %v270_v27, %s1603_s11  ;;  %v605_v1 = vmul.f32 %v604_v50, %v1729_v28  ;;  %v1944_v50 = vrot.slane %v230_v11, %v1789_v33  ;;  %s2059_s16 = sld [smem:[#allocation4 + $0x42]]  ;;  %s2068_s30 = sld [smem:[#allocation4 + $0x53]] }
  0x81   :  { %833 = vrot.lane.b32.xlu0 %v269_v25, %s1602_s10  ;;  %s2077_s6 = sld [smem:[#allocation4 + $0x2f]]  ;;  %s2080_s5 = sld [smem:[#allocation4 + $0x22]] }
  0x82   :  { %v619_v55 = vstv %s1791_s9  ;;  %v1910_v21 = vrot.slane %v605_v1, %v1714_v19  ;;  %s1936_s9 = sld [smem:[#allocation4 + $0x44]]  ;;  %s2088_s27 = sld [smem:[#allocation4 + $0x60]]  ;;  %v715_v7 = vstv %s2040_s23 }
  0x83   :  { %v620_v6 = vmul.f32 %v619_v55, %v1717_v23  ;;  %v748_v55 = vmul.f32 %v747_v17, %v1717_v23  ;;  %s2101_s19 = sld [smem:[#allocation4 + $0x30]]  ;;  %s2106_s17 = sld [smem:[#allocation4 + $0x61]]  ;;  %v716_v3 = vmul.f32 %v715_v7, %v1717_v23 }
  0x84   :  { %828 = vrot.lane.b32.xlu1 %v250_v30, %s1602_s10  ;;  %s1793_s10 = sld [smem:[#allocation4 + $0x39]]  ;;  %3197 = sst [smem:[#allocation47_spill]] %s1818_s3 }
  0x85   :  { %938 = vrot.lane.b32.xlu0 %v249_v29, %s1603_s11  ;;  %3204 = sst [smem:[#allocation54_spill]] %s1865_s8  ;;  %v1923_v26 = vrot.slane %v620_v6, %v1714_v19  ;;  %s1961_s3 = sld [smem:[#allocation4 + $0x56]]  ;;  %v2054_v61 = vrot.slane %v748_v55, %v1714_v19 }
  0x86   :  { %s2007_s8 = sld [smem:[#allocation4 + $0x13]]  ;;  %3228 = sst [smem:[#allocation72_spill]] %s2068_s30 }
  0x87   :  { %3227 = vst [vmem:[#allocation71_spill] sm:$0xff] %v2054_v61  ;;  %s2109_s1 = sld [smem:[#allocation4 + $0x1f]]  ;;  %s3249_s23 = sld [smem:[#allocation39_spill]] }
  0x88   :  { %940 = vrot.lane.b32.xlu1 %v250_v30, %s1603_s11  ;;  %s3278_s0 = sld [smem:[#allocation26_spill]]  ;;  %s3324_s2 = sld [smem:[#allocation36_spill]] }
  0x89   :  { %945 = vrot.lane.b32.xlu0 %v269_v25, %s1603_s11  ;;  %s1795_s11 = sld [smem:[#allocation4 + $0x40]]  ;;  %3232 = sst [smem:[#allocation76_spill]] %s2101_s19 }
  0x8a   :  { %3192 = sst [smem:[#allocation42_spill]] %s1793_s10  ;;  %v425_v14 = vstv %s1793_s10  ;;  %s1938_s10 = sld [smem:[#allocation4 + $0x4b]] }
  0x8b   :  { %3221 = sst [smem:[#allocation65_spill]] %s1961_s3  ;;  %s2092_s3 = sld [smem:[#allocation4 + $0x29]] }
  0x8c   :  { %1052 = vrot.lane.b32.xlu1 %v250_v30, %s1604_s12  ;;  %3233 = sst [smem:[#allocation77_spill]] %s2106_s17  ;;  %s3257_s19 = sld [smem:[#allocation50_spill]] }
  0x8d   :  { %1050 = vrot.lane.b32.xlu0 %v249_v29, %s1604_s12  ;;  %3234 = sst [smem:[#allocation78_spill]] %s2109_s1  ;;  %s3280_s17 = sld [smem:[#allocation35_spill]] }
  0x8e   :  { %s3316_s1 = sld [smem:[#allocation34_spill]]  ;;  %s3332_s13 = sld [smem:[#allocation45_spill]] }
  0x8f   :  { %3193 = sst [smem:[#allocation43_spill]] %s1795_s11  ;;  %s1820_s11 = sld [smem:[#allocation4 + $0xf]] }
  0x90   :  { %1059 = vrot.lane.b32.xlu1 %v270_v27, %s1604_s12  ;;  %v668_v27 = vstv %s1852_s20  ;;  %s1950_s20 = sld [smem:[#allocation4 + $0x1e]]  ;;  %v779_v6 = vstv %s1938_s10  ;;  %s2038_s10 = sld [smem:[#allocation4 + $0x21]] }
  0x91   :  { %1057 = vrot.lane.b32.xlu0 %v269_v25, %s1604_s12  ;;  %s1797_s12 = sld [smem:[#allocation4 + $0x16]]  ;;  %v1920_v25 = vrot.slane %v228_v0, %v1789_v33  ;;  %v669_v2 = vmul.f32 %v668_v27, %v1729_v28  ;;  %3231 = sst [smem:[#allocation75_spill]] %s2092_s3  ;;  %v3259_v33 = vstv %s3249_s23 }
  0x92   :  { %s3251_s30 = sld [smem:[#allocation43_spill]]  ;;  %s3255_s3 = sld [smem:[#allocation46_spill]]  ;;  %v3260_v32 = vmov %v3259_v33 }
  0x93   :  { %v1992_v10 = vrot.slane %v669_v2, %v1714_v19  ;;  %v764_v2 = vstv %s1928_s25  ;;  %s2026_s25 = sld [smem:[#allocation4 + $0x2e]]  ;;  %s3335_s23 = sld [smem:[#allocation37_spill]] }
  0x94   :  { %v765_v9 = vmul.f32 %v764_v2, %v1729_v28 }
  0x95   :  { %3198 = sst [smem:[#allocation48_spill]] %s1820_s11 }
  0x96   :  { %s1970_s11 = sld [smem:[#allocation4 + $0x1b]]  ;;  %v2075_v62 = vrot.slane %v765_v9, %v1714_v19 }
  0x97   :  { %v636_v60 = vstv %s1797_s12  ;;  %s1925_s12 = sld [smem:[#allocation4 + $0x5c]] }
  0x98   :  { %v637_v12 = vmul.f32 %v636_v60, %v1729_v28  ;;  %v733_v60 = vmul.f32 %v732_v16, %v1729_v28  ;;  %3229 = vst [vmem:[#allocation73_spill] sm:$0xff] %v2075_v62 }
  0x9a   :  { %v1932_v30 = vrot.slane %v637_v12, %v1714_v19  ;;  %v684_v12 = vmul.f32 %v683_v34, %v1717_v23  ;;  %v2034_v16 = vrot.slane %v733_v60, %v1714_v19  ;;  %v780_v60 = vmul.f32 %v779_v6, %v1717_v23 }
  0x9b   :  { %v700_v6 = vstv %s1998_s22  ;;  %s2099_s22 = sld [smem:[#allocation4 + $0x5a]] }
  0x9c   :  { %v2003_v11 = vrot.slane %v684_v12, %v1714_v19  ;;  %3226 = vst [vmem:[#allocation70_spill] sm:$0xff] %v2034_v16  ;;  %v796_v17 = vstv %s1970_s11  ;;  %s2065_s11 = sld [smem:[#allocation4 + $0x59]]  ;;  %v2086_v54 = vrot.slane %v780_v60, %v1714_v19 }
  0x9d   :  { %3218 = sst [smem:[#allocation62_spill]] %s1925_s12  ;;  %s2045_s12 = sld [smem:[#allocation4 + $0x5f]]  ;;  %v797_v57 = vmul.f32 %v796_v17, %v1729_v28  ;;  %v701_v17 = vmul.f32 %v700_v6, %v1729_v28 }
  0x9e   :  { %3230 = vst [vmem:[#allocation74_spill] sm:$0xff] %v2086_v54  ;;  %v3270_v54 = vstv %s1860_s14  ;;  %s3284_s14 = sld [smem:[#allocation27_spill]] }
  0x9f   :  { %v2115_v5 = vrot.slane %v797_v57, %v1714_v19 }
  0xa1   :  { %3235 = vst [vmem:[#allocation79_spill] sm:$0xff] %v2115_v5 }
  0xd6   :  { %v2019_v12 = vpop.permute.xlu0 %385  ;;  %v2021_v34 = vpop.permute.xlu1 %273 }
  0xda   :  { %v276_v29 = vpop.permute.xlu1 %275  ;;  %v2070_v55 = vpop.permute.xlu0 %497 }
  0xdb   :  { %v277_v58 = vsel %vm259_vm2, %v2021_v34, %v276_v29  ;;  %v278_v28 = vsel %vm259_vm2, %v276_v29, %v2021_v34  ;;  %v2138_v34 = vrot.slane %v701_v17, %v1714_v19  ;;  %v2165_v29 = vrot.slane %v716_v3, %v1714_v19 }
  0xdc   :  { %v292_v6 = vmul.f32 %v1811_v36, %v278_v28  ;;  %v293_v0 = vmul.f32 %v1814_v37, %v277_v58 }
  0xdd   :  { %3237 = vst [vmem:[#allocation81_spill] sm:$0xff] %v2138_v34  ;;  %3241 = vst [vmem:[#allocation82_spill] sm:$0xff] %v2165_v29 }
  0xde   :  { %v388_v60 = vpop.permute.xlu1 %387  ;;  %v2184_v19 = vmul.f32 %v313_v39, %v292_v6  ;;  %v2188_v3 = vmul.f32 %v313_v39, %v293_v0  ;;  %v2194_v17 = vmul.f32 %v325_v8, %v292_v6  ;;  %v2206_v39 = vmul.f32 %v337_v40, %v293_v0 }
  0xdf   :  { %v2129_v52 = vpop.permute.xlu0 %253  ;;  %v389_v23 = vsel %vm382_vm3, %v2019_v12, %v388_v60  ;;  %v390_v7 = vsel %vm382_vm3, %v388_v60, %v2019_v12  ;;  %v2170_v12 = vmul.f32 %v301_v38, %v292_v6  ;;  %v2174_v60 = vmul.f32 %v301_v38, %v293_v0 }
  0xe0   :  { %v404_v38 = vmul.f32 %v1826_v42, %v390_v7  ;;  %v405_v57 = vmul.f32 %v1835_v45, %v389_v23  ;;  %v2210_v7 = vmul.f32 %v349_v41, %v292_v6  ;;  %v2214_v23 = vmul.f32 %v349_v41, %v293_v0 }
  0xe1   :  { %v2228_v31 = vmul.f32 %v361_v43, %v293_v0  ;;  %v2232_v41 = vmul.f32 %v373_v44, %v292_v6 }
  0xe2   :  { %v500_v56 = vpop.permute.xlu1 %499  ;;  %3245 = vst [vmem:[#allocation83_spill] sm:$0xff] %v2210_v7  ;;  %v2244_v15 = vmul.f32 %v449_v46, %v405_v57  ;;  %v2248_v13 = vmul.f32 %v413_v49, %v405_v57  ;;  %v2264_v63 = vmul.f32 %v425_v14, %v404_v38 }
  0xe3   :  { %v379_v58 = vpop.permute.xlu0 %378  ;;  %v501_v4 = vsel %vm494_vm4, %v2070_v55, %v500_v56  ;;  %v502_v9 = vsel %vm494_vm4, %v500_v56, %v2070_v55  ;;  %v2198_v56 = vmul.f32 %v325_v8, %v293_v0  ;;  %v2202_v55 = vmul.f32 %v337_v40, %v292_v6  ;;  %3252 = vst [vmem:[#allocation87_spill] sm:$0xff] %v2228_v31 }
  0xe4   :  { %v2217_v2 = vmul.f32 %v1843_v47, %v502_v9  ;;  %v2220_v8 = vmul.f32 %v1846_v48, %v501_v4  ;;  %v2224_v40 = vmul.f32 %v361_v43, %v292_v6  ;;  %3253 = vst [vmem:[#allocation88_spill] sm:$0xff] %v2232_v41  ;;  %v2236_v9 = vmul.f32 %v373_v44, %v293_v0 }
  0xe5   :  { %v2240_v4 = vmul.f32 %v449_v46, %v404_v38  ;;  %3258 = vst [vmem:[#allocation91_spill] sm:$0xff] %v2244_v15  ;;  %v2252_v43 = vmul.f32 %v413_v49, %v404_v38  ;;  %v2260_v46 = vmul.f32 %v425_v14, %v405_v57  ;;  %v3263_v14 = vstv %s3255_s3  ;;  %s3340_s3 = sld [smem:[#allocation49_spill]] }
  0xe6   :  { %v2159_v27 = vpop.permute.xlu1 %835  ;;  %3247 = vst [vmem:[#allocation84_spill] sm:$0xff] %v2217_v2  ;;  %3248 = vst [vmem:[#allocation85_spill] sm:$0xff] %v2220_v8  ;;  %v2269_v49 = vmul.f32 %v3259_v33, %v2220_v8  ;;  %v2274_v34 = vmul.f32 %v3260_v32, %v2217_v2  ;;  %v3264_v33 = vstv %s3257_s19  ;;  %v3265_v32 = vmov %v3263_v14  ;;  %s3274_s19 = sld [smem:[#allocation25_spill]] }
  0xe7   :  { %v491_v28 = vpop.permute.xlu0 %490  ;;  %3250 = vst [vmem:[#allocation86_spill] sm:$0xff] %v2224_v40  ;;  %3254 = vst [vmem:[#allocation89_spill] sm:$0xff] %v2236_v9  ;;  %v2294_v53 = vmul.f32 %v3264_v33, %v2220_v8  ;;  %v2298_v5 = vmul.f32 %v3265_v32, %v404_v38  ;;  %v3272_v9 = vstv %s1876_s26  ;;  %s3286_s26 = sld [smem:[#allocation32_spill]] }
  0xe8   :  { %3256 = vst [vmem:[#allocation90_spill] sm:$0xff] %v2240_v4  ;;  %v2289_v4 = vmul.f32 %v3263_v14, %v405_v57  ;;  %v2318_v32 = vmul.f32 %v3272_v9, %v2220_v8 }
  0xea   :  { %v381_v1 = vpop.permute.xlu1 %380  ;;  %3273 = vst [vmem:[#allocation96_spill] sm:$0xff] %v2318_v32 }
  0xeb   :  { %v383_v44 = vsel %vm382_vm3, %v379_v58, %v381_v1  ;;  %v384_v0 = vsel %vm382_vm3, %v381_v1, %v379_v58  ;;  %v256_v6 = vpop.permute.xlu0 %255  ;;  %v3261_v1 = vstv %s3251_s30  ;;  %s3337_s30 = sld [smem:[#allocation47_spill]] }
  0xec   :  { %v2279_v58 = vmul.f32 %v3261_v1, %v2220_v8  ;;  %v3262_v29 = vmov %v3261_v1  ;;  %v3266_v1 = vmov %v3264_v33  ;;  %v2309_v14 = vmul.f32 %v1835_v45, %v383_v44 }
  0xed   :  { %v2284_v15 = vmul.f32 %v3262_v29, %v2217_v2  ;;  %v2303_v41 = vmul.f32 %v3266_v1, %v2217_v2  ;;  %v2306_v29 = vmul.f32 %v1826_v42, %v384_v0  ;;  %v2313_v33 = vmul.f32 %v3270_v54, %v405_v57 }
  0xee   :  { %v493_v51 = vpop.permute.xlu1 %492  ;;  %3269 = vst [vmem:[#allocation94_spill] sm:$0xff] %v2309_v14  ;;  %v260_v1 = vsel %vm259_vm2, %v2129_v52, %v256_v6  ;;  %v261_v42 = vsel %vm259_vm2, %v256_v6, %v2129_v52  ;;  %v3275_v44 = vmov %v3270_v54  ;;  %v3277_v0 = vmov %v3272_v9 }
  0xef   :  { %3267 = vst [vmem:[#allocation92_spill] sm:$0xff] %v2303_v41  ;;  %3268 = vst [vmem:[#allocation93_spill] sm:$0xff] %v2306_v29  ;;  %v827_v45 = vpop.permute.xlu0 %826  ;;  %v2328_v54 = vmul.f32 %v3275_v44, %v404_v38  ;;  %v2333_v9 = vmul.f32 %v3277_v0, %v2217_v2  ;;  %v2336_v62 = vmul.f32 %v1811_v36, %v261_v42  ;;  %v3281_v6 = vstv %s1914_s18  ;;  %s3300_s18 = sld [smem:[#allocation29_spill]] }
  0xf0   :  { %3271 = vst [vmem:[#allocation95_spill] sm:$0xff] %v2313_v33  ;;  %v2339_v40 = vmul.f32 %v1814_v37, %v260_v1  ;;  %v2345_v61 = vmul.f32 %v3281_v6, %v405_v57  ;;  %v3283_v44 = vstv %s1936_s9  ;;  %v3287_v36 = vmov %v3281_v6  ;;  %s3304_s9 = sld [smem:[#allocation30_spill]] }
  0xf1   :  { %3276 = vst [vmem:[#allocation97_spill] sm:$0xff] %v2328_v54  ;;  %3279 = vst [vmem:[#allocation98_spill] sm:$0xff] %v2333_v9  ;;  %v2350_v31 = vmul.f32 %v3283_v44, %v2220_v8  ;;  %v2355_v42 = vmul.f32 %v3287_v36, %v404_v38  ;;  %v3289_v37 = vmov %v3283_v44  ;;  %v3291_v0 = vstv %s1977_s7  ;;  %s3307_s7 = sld [smem:[#allocation31_spill]] }
  0xf2   :  { %v2341_v52 = vpop.permute.xlu1 %947  ;;  %3282 = vst [vmem:[#allocation99_spill] sm:$0xff] %v2345_v61  ;;  %v2360_v1 = vmul.f32 %v3289_v37, %v2217_v2  ;;  %v2364_v9 = vmul.f32 %v3291_v0, %v405_v57  ;;  %v3293_v6 = vstv %s1996_s15  ;;  %v3295_v44 = vstv %s3274_s19  ;;  %s3310_s15 = sld [smem:[#allocation33_spill]]  ;;  %s3345_s19 = sld [smem:[#allocation48_spill]] }
  0xf3   :  { %3285 = vst [vmem:[#allocation100_spill] sm:$0xff] %v2350_v31  ;;  %3288 = vst [vmem:[#allocation101_spill] sm:$0xff] %v2355_v42  ;;  %v2369_v61 = vmul.f32 %v3293_v6, %v2220_v8  ;;  %v409_v31 = vmul.f32 %v3295_v44, %v2306_v29  ;;  %v3296_v16 = vmov %v3295_v44  ;;  %v3297_v42 = vmov %v3291_v0 }
  0xf4   :  { %3290 = vst [vmem:[#allocation102_spill] sm:$0xff] %v2360_v1  ;;  %3292 = vst [vmem:[#allocation103_spill] sm:$0xff] %v2364_v9  ;;  %v410_v36 = vmul.f32 %v3296_v16, %v2309_v14  ;;  %v2379_v54 = vmul.f32 %v3297_v42, %v404_v38  ;;  %v3299_v37 = vmov %v3293_v6  ;;  %v3302_v0 = vstv %s3278_s0  ;;  %s3347_s0 = sld [smem:[#allocation51_spill]] }
  0xf5   :  { %3294 = vst [vmem:[#allocation104_spill] sm:$0xff] %v2369_v61  ;;  %v2384_v57 = vmul.f32 %v3299_v37, %v2217_v2  ;;  %v2389_v6 = vmul.f32 %v3302_v0, %v2306_v29  ;;  %v3303_v8 = vmov %v3302_v0  ;;  %v3305_v61 = vstv %s3280_s17  ;;  %v834_v37 = vpop.permute.xlu0 %833  ;;  %s3351_s17 = sld [smem:[#allocation55_spill]] }
  0xf6   :  { %3298 = vst [vmem:[#allocation105_spill] sm:$0xff] %v2379_v54  ;;  %v422_v44 = vmul.f32 %v3303_v8, %v2309_v14  ;;  %v333_v16 = vmul.f32 %v3305_v61, %v2336_v62  ;;  %v3306_v38 = vmov %v3305_v61  ;;  %v3309_v0 = vstv %s3286_s26  ;;  %v829_v9 = vpop.permute.xlu1 %828  ;;  %s3358_s26 = sld [smem:[#allocation52_spill]] }
  0xf7   :  { %3301 = vst [vmem:[#allocation106_spill] sm:$0xff] %v2384_v57  ;;  %v334_v42 = vmul.f32 %v3306_v38, %v2339_v40  ;;  %v3308_v57 = vstv %s3284_s14  ;;  %v298_v54 = vmul.f32 %v3309_v0, %v2339_v40  ;;  %v495_v8 = vsel %vm494_vm4, %v491_v28, %v493_v51  ;;  %s3354_s14 = sld [smem:[#allocation53_spill]] }
  0xf8   :  { %v2403_v2 = vmul.f32 %v3308_v57, %v2306_v29  ;;  %v496_v61 = vsel %vm494_vm4, %v493_v51, %v491_v28  ;;  %v3311_v1 = vmov %v3308_v57  ;;  %v3312_v32 = vmov %v3309_v0 }
  0xf9   :  { %v2415_v38 = vmul.f32 %v3311_v1, %v2309_v14  ;;  %v297_v7 = vmul.f32 %v3312_v32, %v2336_v62  ;;  %v2421_v57 = vadd.f32 %v2202_v55, %v333_v16  ;;  %v2424_v0 = vadd.f32 %v2206_v39, %v334_v42 }
  0xfa   :  { %v3315_v33 = vstv %s3300_s18  ;;  %v3319_v1 = vstv %s3304_s9  ;;  %v3323_v39 = vstv %s3307_s7  ;;  %s3359_s18 = sld [smem:[#allocation54_spill]]  ;;  %s3361_s9 = sld [smem:[#allocation56_spill]] }
  0xfb   :  { %3313 = vst [vmem:[#allocation107_spill] sm:$0xff] %v2421_v57  ;;  %3314 = vst [vmem:[#allocation108_spill] sm:$0xff] %v2424_v0  ;;  %v2429_v41 = vmul.f32 %v3315_v33, %v2306_v29  ;;  %v3318_v51 = vmov %v3315_v33  ;;  %v2439_v32 = vmul.f32 %v3319_v1, %v2306_v29  ;;  %v3321_v55 = vmov %v3319_v1  ;;  %v939_v1 = vpop.permute.xlu0 %938  ;;  %s3363_s7 = sld [smem:[#allocation58_spill]] }
  0xfc   :  { %v2434_v28 = vmul.f32 %v3318_v51, %v2309_v14  ;;  %v2444_v16 = vmul.f32 %v3321_v55, %v2309_v14  ;;  %v2449_v42 = vmul.f32 %v3323_v39, %v2306_v29  ;;  %v3326_v33 = vmov %v3323_v39 }
  0xfd   :  { %3317 = vst [vmem:[#allocation109_spill] sm:$0xff] %v2429_v41  ;;  %3320 = vst [vmem:[#allocation110_spill] sm:$0xff] %v2439_v32  ;;  %v2454_v0 = vmul.f32 %v3326_v33, %v2309_v14  ;;  %v2457_v51 = vmul.f32 %v1843_v47, %v496_v61  ;;  %v2460_v57 = vmul.f32 %v1846_v48, %v495_v8  ;;  %v3328_v55 = vstv %s3310_s15  ;;  %v941_v14 = vpop.permute.xlu1 %940  ;;  %s3368_s15 = sld [smem:[#allocation57_spill]] }
  0xfe   :  { %3322 = vst [vmem:[#allocation111_spill] sm:$0xff] %v2444_v16  ;;  %3325 = vst [vmem:[#allocation112_spill] sm:$0xff] %v2449_v42  ;;  %v309_v32 = vmul.f32 %v3328_v55, %v2336_v62  ;;  %v837_v39 = vsel %vm830_vm5, %v834_v37, %v2159_v27  ;;  %v838_v33 = vsel %vm830_vm5, %v2159_v27, %v834_v37  ;;  %v3329_v61 = vmov %v3328_v55 }
  0xff   :  { %3327 = vst [vmem:[#allocation113_spill] sm:$0xff] %v2454_v0  ;;  %v305_v47 = vadd.f32 %v2174_v60, %v298_v54  ;;  %v310_v48 = vmul.f32 %v3329_v61, %v2339_v40  ;;  %v3330_v8 = vstv %s3316_s1  ;;  %v304_v0 = vadd.f32 %v2170_v12, %v297_v7  ;;  %s3371_s1 = sld [smem:[#allocation59_spill]] }
 0x100   :  { %v2478_v29 = vmul.f32 %v3330_v8, %v2336_v62  ;;  %v3331_v55 = vmov %v3330_v8  ;;  %v3333_v27 = vstv %s3324_s2  ;;  %v831_v60 = vsel %vm830_vm5, %v827_v45, %v829_v9  ;;  %s3375_s2 = sld [smem:[#allocation60_spill]] }
 0x101   :  { %v2483_v42 = vmul.f32 %v3331_v55, %v2339_v40  ;;  %v2490_v37 = vmul.f32 %v3333_v27, %v2336_v62  ;;  %v832_v54 = vsel %vm830_vm5, %v829_v9, %v827_v45  ;;  %v412_v61 = vadd.f32 %v410_v36, %v305_v47  ;;  %v1053_v9 = vpop.permute.xlu1 %1052 }
 0x102   :  { %v3336_v8 = vmov %v3333_v27  ;;  %v2502_v12 = vmul.f32 %v1904_v18, %v837_v39  ;;  %v2505_v7 = vmul.f32 %v1907_v20, %v838_v33  ;;  %v946_v27 = vpop.permute.xlu0 %945  ;;  %v411_v16 = vadd.f32 %v409_v31, %v304_v0 }
 0x103   :  { %3334 = vst [vmem:[#allocation114_spill] sm:$0xff] %v2490_v37  ;;  %v2499_v55 = vmul.f32 %v3336_v8, %v2339_v40  ;;  %v943_v41 = vsel %vm942_vm6, %v939_v1, %v941_v14  ;;  %v944_v45 = vsel %vm942_vm6, %v941_v14, %v939_v1  ;;  %v417_v36 = vadd.f32 %v2248_v13, %v412_v61 }
 0x104   :  { %v3338_v47 = vstv %s3332_s13  ;;  %v2516_v39 = vmul.f32 %v1904_v18, %v831_v60  ;;  %v2519_v33 = vmul.f32 %v1907_v20, %v832_v54  ;;  %v416_v31 = vadd.f32 %v2252_v43, %v411_v16  ;;  %s3377_s13 = sld [smem:[#allocation62_spill]] }
 0x105   :  { %v522_v8 = vmul.f32 %v3338_v47, %v2460_v57  ;;  %v3339_v0 = vmov %v3338_v47  ;;  %v3341_v14 = vstv %s3335_s23  ;;  %v317_v20 = vadd.f32 %v2188_v3, %v310_v48  ;;  %s3379_s23 = sld [smem:[#allocation38_spill]] }
 0x106   :  { %v521_v37 = vmul.f32 %v3339_v0, %v2457_v51  ;;  %v2528_v1 = vmul.f32 %v3341_v14, %v2336_v62  ;;  %v3343_v13 = vmov %v3341_v14  ;;  %v2537_v60 = vmul.f32 %v1917_v24, %v943_v41  ;;  %v1051_v16 = vpop.permute.xlu0 %1050 }
 0x107   :  { %v2533_v61 = vmul.f32 %v3343_v13, %v2339_v40  ;;  %v524_v18 = vadd.f32 %v522_v8, %v417_v36  ;;  %v2540_v43 = vmul.f32 %v1920_v25, %v944_v45  ;;  %v3346_v54 = vstv %s3337_s30  ;;  %v1060_v36 = vpop.permute.xlu1 %1059  ;;  %s1605_s30 = smov 3  }
 0x108   :  { %3342 = vst [vmem:[#allocation115_spill] sm:$0xff] %v2528_v1  ;;  %v863_v47 = vmul.f32 %v3346_v54, %v2505_v7  ;;  %v523_v0 = vadd.f32 %v521_v37, %v416_v31  ;;  %v949_v14 = vsel %vm942_vm6, %v946_v27, %v2341_v52  ;;  %v950_v3 = vsel %vm942_vm6, %v2341_v52, %v946_v27 }
 0x109   :  { %3344 = vst [vmem:[#allocation116_spill] sm:$0xff] %v2533_v61  ;;  %v529_v41 = vadd.f32 %v2269_v49, %v524_v18  ;;  %v424_v48 = vadd.f32 %v422_v44, %v317_v20  ;;  %v3348_v45 = vstv %s3340_s3  ;;  %v862_v1 = vmul.f32 %v3346_v54, %v2502_v12  ;;  %s3388_s3 = sld [smem:[#allocation61_spill]] }
 0x10a   :  { %v858_v8 = vmul.f32 %v3348_v45, %v2519_v33  ;;  %v528_v13 = vadd.f32 %v2274_v34, %v523_v0  ;;  %v3349_v37 = vmov %v3348_v45  ;;  %v3350_v61 = vcombine.high %v1910_v21, %v1910_v21  ;;  %v1058_v0 = vpop.permute.xlu0 %1057 }
 0x10b   :  { %v857_v31 = vmul.f32 %v3349_v37, %v2516_v39  ;;  %v429_v49 = vadd.f32 %v2260_v46, %v424_v48  ;;  %v3352_v44 = vstv %s3345_s19  ;;  %v316_v18 = vadd.f32 %v2184_v19, %v309_v32 }
 0x10c   :  { %v618_v52 = vadd.f32 %v3350_v61, %v529_v41  ;;  %v534_v27 = vmul.f32 %v3352_v44, %v2460_v57  ;;  %v2571_v34 = vmul.f32 %v1917_v24, %v949_v14  ;;  %v2574_v20 = vmul.f32 %v1920_v25, %v950_v3 }
 0x10d   :  { %v3353_v45 = vstv %s3347_s0  ;;  %v617_v61 = vadd.f32 %v1910_v21, %v528_v13  ;;  %v1056_v46 = vsel %vm1054_vm7, %v1053_v9, %v1051_v16  ;;  %v1062_v41 = vsel %vm1054_vm7, %v1060_v36, %v1058_v0  ;;  %s3392_s0 = sld [smem:[#allocation64_spill]] }
 0x10e   :  { %v970_v37 = vmul.f32 %v3353_v45, %v2540_v43  ;;  %v3355_v24 = vcombine.high %v1923_v26, %v1923_v26  ;;  %v536_v32 = vadd.f32 %v534_v27, %v429_v49  ;;  %v3356_v14 = vmov %v3353_v45 }
 0x10f   :  { %v632_v25 = vadd.f32 %v1923_v26, %v617_v61  ;;  %v969_v3 = vmul.f32 %v3356_v14, %v2537_v60  ;;  %v3357_v48 = vstv %s3351_s17  ;;  %v423_v13 = vadd.f32 %v2389_v6, %v316_v18 }
 0x110   :  { %v633_v19 = vadd.f32 %v3355_v24, %v618_v52  ;;  %v870_v21 = vmul.f32 %v3357_v48, %v2519_v33  ;;  %v1055_v54 = vsel %vm1054_vm7, %v1051_v16, %v1053_v9  ;;  %v1061_v44 = vsel %vm1054_vm7, %v1058_v0, %v1060_v36 }
 0x111   :  { %v541_v49 = vadd.f32 %v2279_v58, %v536_v32  ;;  %v2601_v26 = vmul.f32 %v1944_v50, %v1056_v46  ;;  %v2604_v27 = vmul.f32 %v1944_v50, %v1062_v41  ;;  %v3360_v6 = vstv %s3354_s14  ;;  %s3397_s14 = sld [smem:[#allocation67_spill]] }
 0x112   :  { %v860_v52 = vadd.f32 %v858_v8, %v633_v19  ;;  %v975_v18 = vmul.f32 %v3360_v6, %v2574_v20  ;;  %v859_v45 = vadd.f32 %v857_v31, %v632_v25  ;;  %v3362_v16 = vcombine.high %v1932_v30, %v1932_v30 }
 0x113   :  { %v428_v58 = vadd.f32 %v2264_v63, %v423_v13  ;;  %v3364_v8 = vstv %s3345_s19  ;;  %v2617_v61 = vmul.f32 %v1941_v35, %v1055_v54  ;;  %v2620_v50 = vmul.f32 %v1941_v35, %v1061_v44  ;;  %s3391_s19 = sld [smem:[#allocation63_spill]] }
 0x114   :  { %v865_v9 = vadd.f32 %v863_v47, %v860_v52  ;;  %v650_v36 = vadd.f32 %v3362_v16, %v541_v49  ;;  %v533_v0 = vmul.f32 %v3364_v8, %v2457_v51  ;;  %v864_v46 = vadd.f32 %v862_v1, %v859_v45 }
 0x115   :  { %v3365_v47 = vmov %v3360_v6  ;;  %v3366_v24 = vcombine.high %v1948_v59, %v1948_v59  ;;  %v3367_v19 = vstv %s3358_s26  ;;  %v3369_v14 = vstv %s3359_s18  ;;  %s3402_s18 = sld [smem:[#allocation69_spill]] }
 0x116   :  { %v974_v31 = vmul.f32 %v3365_v47, %v2571_v34  ;;  %v972_v41 = vadd.f32 %v970_v37, %v865_v9  ;;  %v875_v32 = vmul.f32 %v3367_v19, %v2505_v7  ;;  %v535_v25 = vadd.f32 %v533_v0, %v428_v58 }
 0x117   :  { %v665_v63 = vadd.f32 %v3366_v24, %v650_v36  ;;  %v1082_v35 = vmul.f32 %v3369_v14, %v2601_v26  ;;  %v971_v48 = vadd.f32 %v969_v3, %v864_v46  ;;  %v3370_v1 = vstv %s3361_s9 }
 0x118   :  { %v982_v13 = vmul.f32 %v3370_v1, %v2540_v43  ;;  %v329_v37 = vadd.f32 %v2198_v56, %v2483_v42  ;;  %v977_v54 = vadd.f32 %v975_v18, %v972_v41  ;;  %v3372_v44 = vstv %s3363_s7  ;;  %s1607_s7 = smov 1  }
 0x119   :  { %v1087_v52 = vmul.f32 %v3372_v44, %v2604_v27  ;;  %v872_v49 = vadd.f32 %v870_v21, %v665_v63  ;;  %v540_v6 = vadd.f32 %v2284_v15, %v535_v25  ;;  %v976_v45 = vadd.f32 %v974_v31, %v971_v48 }
 0x11a   :  { %v3373_v9 = vmov %v3369_v14  ;;  %v3374_v3 = vmov %v3372_v44  ;;  %v436_v58 = vadd.f32 %v2415_v38, %v329_v37  ;;  %v1084_v8 = vadd.f32 %v1082_v35, %v977_v54 }
 0x11b   :  { %v1081_v16 = vmul.f32 %v3373_v9, %v2617_v61  ;;  %v1086_v36 = vmul.f32 %v3374_v3, %v2620_v50  ;;  %v877_v56 = vadd.f32 %v875_v32, %v872_v49  ;;  %v3376_v42 = vstv %s3368_s15  ;;  %s1611_s15 = smov [#allocation12]  }
 0x11c   :  { %v987_v18 = vmul.f32 %v3376_v42, %v2574_v20  ;;  %v649_v21 = vadd.f32 %v1932_v30, %v540_v6  ;;  %v441_v0 = vadd.f32 %v2289_v4, %v436_v58  ;;  %v3378_v46 = vstv %s3371_s1  ;;  %s1341_s1 = sshll.u32 %s1611_s15, 4  ;;  %s1342_s1 = int_to_ptr.vmem [resolvable:$true] %s1341_s1 }
 0x11d   :  { %v1083_v15 = vadd.f32 %v1081_v16, %v976_v45  ;;  %v546_v47 = vmul.f32 %v3378_v46, %v2460_v57  ;;  %v328_v31 = vadd.f32 %v2194_v17, %v2478_v29  ;;  %v1089_v38 = vadd.f32 %v1087_v52, %v1084_v8  ;;  %p1566_p0 = scmp.lt.s32.totalorder %s1342_s1, %s1342_s1 }
 0x11e   :  { %v984_v41 = vadd.f32 %v982_v13, %v877_v56  ;;  %v664_v24 = vadd.f32 %v1948_v59, %v649_v21  ;;  %v3380_v63 = vstv %s3351_s17  ;;  %v3381_v32 = vstv %s3375_s2  ;;  %s3395_s17 = sld [smem:[#allocation65_spill]]  ;;  %s1561_s2 = scalar_lea.vmem %s1342_s1, 64 }
 0x11f   :  { %v869_v30 = vmul.f32 %v3380_v63, %v2516_v39  ;;  %v1088_v19 = vadd.f32 %v1086_v36, %v1083_v15  ;;  %v1094_v4 = vmul.f32 %v3381_v32, %v2601_v26  ;;  %v548_v25 = vadd.f32 %v546_v47, %v441_v0  ;;  %1164 = vrot.lane.b32.xlu1 %v1089_v38, %s1605_s30  ;;  %v3401_v63 = vld [vmem:[#allocation95_spill] sm:$0xff]  ;;  %p1562_p13 = scmp.ne.s32.totalorder %s1342_s1, %s1561_s2  ;;  %p1567_p1 = scmp.lt.s32.totalorder %s1561_s2, %s1561_s2 }
 0x120   :  { %v435_v14 = vadd.f32 %v2403_v2, %v328_v31  ;;  %v989_v17 = vadd.f32 %v987_v18, %v984_v41  ;;  %v3382_v29 = vstv %s3377_s13  ;;  %v3383_v48 = vstv %s3358_s26  ;;  %v3399_v31 = vld [vmem:[#allocation92_spill] sm:$0xff]  ;;  %s1606_s26 = smov 2  }
 0x121   :  { %v1099_v59 = vmul.f32 %v3382_v29, %v2604_v27  ;;  %v871_v35 = vadd.f32 %v869_v30, %v664_v24  ;;  %v874_v1 = vmul.f32 %v3383_v48, %v2502_v12  ;;  %v3384_v13 = vstv %s3379_s23  ;;  %1162 = vrot.lane.b32.xlu0 %v1088_v19, %s1605_s30  ;;  %p1568_p2 = por %p1567_p1, %p1566_p0 }
 0x122   :  { %v2677_v37 = vmul.f32 %v3384_v13, %v2336_v62  ;;  %v553_v2 = vadd.f32 %v2294_v53, %v548_v25  ;;  %v440_v54 = vadd.f32 %v2298_v5, %v435_v14  ;;  %v3385_v44 = vmov %v3378_v46 }
 0x123   :  { %v545_v52 = vmul.f32 %v3385_v44, %v2457_v51  ;;  %v1096_v49 = vadd.f32 %v1094_v4, %v989_v17  ;;  %v876_v6 = vadd.f32 %v874_v1, %v871_v35  ;;  %v3386_v45 = vstv %s3361_s9  ;;  %s3414_s9 = sld [smem:[#allocation68_spill]]  ;;  %p1569_p3 = pnand %p1568_p2, %p1562_p13 }
 0x124   :  { %v981_v9 = vmul.f32 %v3386_v45, %v2537_v60  ;;  %v353_v16 = vadd.f32 %v2214_v23, %v2499_v55  ;;  %v3387_v62 = vmov %v3384_v13  ;;  %v3389_v53 = vmov %v3376_v42  ;;  %v3410_v45 = vld [vmem:[#allocation109_spill] sm:$0xff] }
 0x125   :  { %v2692_v3 = vmul.f32 %v3387_v62, %v2339_v40  ;;  %v986_v5 = vmul.f32 %v3389_v53, %v2571_v34  ;;  %v3390_v36 = vcombine.high %v1992_v10, %v1992_v10  ;;  %v547_v8 = vadd.f32 %v545_v52, %v440_v54 }
 0x126   :  { %v1101_v56 = vadd.f32 %v1099_v59, %v1096_v49  ;;  %v983_v42 = vadd.f32 %v981_v9, %v876_v6  ;;  %v3393_v18 = vmov %v3381_v32  ;;  %v460_v55 = vadd.f32 %v2434_v28, %v353_v16  ;;  %v3406_v59 = vld [vmem:[#allocation83_spill] sm:$0xff] }
 0x127   :  { %v682_v58 = vadd.f32 %v3390_v36, %v553_v2  ;;  %v1093_v23 = vmul.f32 %v3393_v18, %v2617_v61  ;;  %v3394_v40 = vmov %v3382_v29  ;;  %v3396_v15 = vcombine.high %v2003_v11, %v2003_v11  ;;  %v3405_v29 = vld [vmem:[#allocation114_spill] sm:$0xff] }
 0x128   :  { %v1098_v21 = vmul.f32 %v3394_v40, %v2620_v50  ;;  %v3398_v46 = vstv %s1950_s20  ;;  %v552_v38 = vadd.f32 %v3399_v31, %v547_v8  ;;  %1184 = vrot.lane.b32.xlu1 %v1101_v56, %s1606_s26  ;;  %v988_v41 = vadd.f32 %v986_v5, %v983_v42  ;;  %s3417_s20 = sld [smem:[#allocation66_spill]] }
 0x129   :  { %v697_v0 = vadd.f32 %v3396_v15, %v682_v58  ;;  %v882_v47 = vmul.f32 %v3398_v46, %v2519_v33  ;;  %v3400_v28 = vstv %s3388_s3  ;;  %v465_v30 = vadd.f32 %v3401_v63, %v460_v55  ;;  %v3413_v58 = vld [vmem:[#allocation96_spill] sm:$0xff] }
 0x12a   :  { %v887_v24 = vmul.f32 %v3400_v28, %v2505_v7  ;;  %v3403_v19 = vstv %s3391_s19  ;;  %v3404_v25 = vstv %s3392_s0  ;;  %v681_v17 = vadd.f32 %v1992_v10, %v552_v38  ;;  %v3422_v38 = vld [vmem:[#allocation116_spill] sm:$0xff] }
 0x12b   :  { %v570_v32 = vmul.f32 %v3403_v19, %v2460_v57  ;;  %v884_v4 = vadd.f32 %v882_v47, %v697_v0  ;;  %v994_v14 = vmul.f32 %v3404_v25, %v2540_v43  ;;  %v352_v35 = vadd.f32 %v3406_v59, %v3405_v29 }
 0x12c   :  { %v1095_v48 = vadd.f32 %v1093_v23, %v988_v41  ;;  %v3407_v1 = vstv %s3395_s17  ;;  %v3408_v2 = vstv %s3397_s14  ;;  %v696_v49 = vadd.f32 %v2003_v11, %v681_v17  ;;  %v3415_v11 = vld [vmem:[#allocation97_spill] sm:$0xff]  ;;  %v3423_v41 = vld [vmem:[#allocation87_spill] sm:$0xff] }
 0x12d   :  { %v999_v13 = vmul.f32 %v3407_v1, %v2574_v20  ;;  %v1106_v54 = vmul.f32 %v3408_v2, %v2601_v26  ;;  %v572_v44 = vadd.f32 %v570_v32, %v465_v30  ;;  %v889_v52 = vadd.f32 %v887_v24, %v884_v4 }
 0x12e   :  { %v3409_v6 = vmov %v3398_v46  ;;  %v459_v9 = vadd.f32 %v3410_v45, %v352_v35  ;;  %v1100_v16 = vadd.f32 %v1098_v21, %v1095_v48  ;;  %v3411_v62 = vstv %s3402_s18  ;;  %v3420_v46 = vld [vmem:[#allocation70_spill] sm:$0xff] }
 0x12f   :  { %v881_v10 = vmul.f32 %v3409_v6, %v2516_v39  ;;  %v1111_v53 = vmul.f32 %v3411_v62, %v2604_v27  ;;  %v3412_v5 = vmov %v3400_v28  ;;  %v577_v8 = vadd.f32 %v3413_v58, %v572_v44  ;;  %v3429_v48 = vld [vmem:[#allocation111_spill] sm:$0xff] }
 0x130   :  { %v886_v36 = vmul.f32 %v3412_v5, %v2502_v12  ;;  %v996_v56 = vadd.f32 %v994_v14, %v889_v52  ;;  %v464_v18 = vadd.f32 %v3415_v11, %v459_v9  ;;  %v3416_v23 = vmov %v3403_v19  ;;  %1182 = vrot.lane.b32.xlu0 %v1100_v16, %s1606_s26  ;;  %v3426_v14 = vld [vmem:[#allocation71_spill] sm:$0xff]  ;;  %v3432_v45 = vld [vmem:[#allocation99_spill] sm:$0xff] }
 0x131   :  { %v883_v42 = vadd.f32 %v881_v10, %v696_v49  ;;  %v569_v55 = vmul.f32 %v3416_v23, %v2457_v51  ;;  %v3418_v40 = vmov %v3404_v25  ;;  %v3419_v15 = vmov %v3407_v1  ;;  %v3431_v49 = vld [vmem:[#allocation98_spill] sm:$0xff]  ;;  %v3434_v5 = vld [vmem:[#allocation115_spill] sm:$0xff] }
 0x132   :  { %v993_v21 = vmul.f32 %v3418_v40, %v2537_v60  ;;  %v998_v0 = vmul.f32 %v3419_v15, %v2571_v34  ;;  %v3421_v47 = vcombine.high %v3420_v46, %v3420_v46  ;;  %v365_v28 = vadd.f32 %v3423_v41, %v3422_v38 }
 0x133   :  { %v1001_v24 = vadd.f32 %v999_v13, %v996_v56  ;;  %v888_v63 = vadd.f32 %v886_v36, %v883_v42  ;;  %v3424_v30 = vmov %v3408_v2  ;;  %v571_v32 = vadd.f32 %v569_v55, %v464_v18  ;;  %v3435_v36 = vld [vmem:[#allocation86_spill] sm:$0xff] }
 0x134   :  { %v746_v31 = vadd.f32 %v3421_v47, %v577_v8  ;;  %v1105_v19 = vmul.f32 %v3424_v30, %v2617_v61  ;;  %v3425_v4 = vmov %v3411_v62  ;;  %v3427_v17 = vcombine.high %v3426_v14, %v3426_v14 }
 0x135   :  { %v1110_v25 = vmul.f32 %v3425_v4, %v2620_v50  ;;  %v3428_v59 = vstv %s3414_s9  ;;  %v472_v1 = vadd.f32 %v3429_v48, %v365_v28  ;;  %v1108_v13 = vadd.f32 %v1106_v54, %v1001_v24  ;;  %v3441_v28 = vld [vmem:[#allocation100_spill] sm:$0xff] }
 0x136   :  { %v761_v29 = vadd.f32 %v3427_v17, %v746_v31  ;;  %v906_v35 = vmul.f32 %v3428_v59, %v2519_v33  ;;  %v995_v2 = vadd.f32 %v993_v21, %v888_v63  ;;  %v3430_v44 = vstv %s3417_s20  ;;  %v3438_v21 = vld [vmem:[#allocation110_spill] sm:$0xff]  ;;  %v3442_v63 = vld [vmem:[#allocation101_spill] sm:$0xff] }
 0x137   :  { %v911_v52 = vmul.f32 %v3430_v44, %v2505_v7  ;;  %v576_v6 = vadd.f32 %v3431_v49, %v571_v32  ;;  %v477_v9 = vadd.f32 %v3432_v45, %v472_v1  ;;  %v3433_v16 = vstv %s2007_s8  ;;  %v3446_v1 = vld [vmem:[#allocation73_spill] sm:$0xff]  ;;  %s3491_s8 = sld [smem:[#allocation75_spill]] }
 0x138   :  { %v908_v10 = vadd.f32 %v906_v35, %v761_v29  ;;  %v582_v62 = vmul.f32 %v3433_v16, %v2460_v57  ;;  %v364_v58 = vadd.f32 %v3435_v36, %v3434_v5  ;;  %v1113_v8 = vadd.f32 %v1111_v53, %v1108_v13  ;;  %v3452_v36 = vld [vmem:[#allocation74_spill] sm:$0xff] }
 0x139   :  { %v1000_v56 = vadd.f32 %v998_v0, %v995_v2  ;;  %v3436_v54 = vstv %s2014_s24  ;;  %v745_v11 = vadd.f32 %v3420_v46, %v576_v6  ;;  %v3437_v23 = vstv %s2016_s21  ;;  %s1608_s21 = smov 127   ;;  %s3465_s24 = sld [smem:[#allocation28_spill]] }
 0x13a   :  { %v1018_v42 = vmul.f32 %v3436_v54, %v2540_v43  ;;  %v913_v18 = vadd.f32 %v911_v52, %v908_v10  ;;  %v1023_v55 = vmul.f32 %v3437_v23, %v2574_v20  ;;  %v584_v40 = vadd.f32 %v582_v62, %v477_v9  ;;  %1206 = vrot.lane.b32.xlu1 %v1113_v8, %s1607_s7  ;;  %v3448_v52 = vld [vmem:[#allocation89_spill] sm:$0xff] }
 0x13b   :  { %v471_v15 = vadd.f32 %v3438_v21, %v364_v58  ;;  %v1107_v47 = vadd.f32 %v1105_v19, %v1000_v56  ;;  %v3439_v53 = vstv %s2026_s25  ;;  %v760_v31 = vadd.f32 %v3426_v14, %v745_v11  ;;  %v3454_v56 = vld [vmem:[#allocation102_spill] sm:$0xff]  ;;  %s3498_s25 = sld [smem:[#allocation76_spill]] }
 0x13c   :  { %v1130_v0 = vmul.f32 %v3439_v53, %v2601_v26  ;;  %v3440_v38 = vmov %v3428_v59  ;;  %v1020_v41 = vadd.f32 %v1018_v42, %v913_v18  ;;  %v589_v24 = vadd.f32 %v3441_v28, %v584_v40 }
 0x13d   :  { %v905_v46 = vmul.f32 %v3440_v38, %v2516_v39  ;;  %v476_v30 = vadd.f32 %v3442_v63, %v471_v15  ;;  %v3443_v32 = vmov %v3433_v16  ;;  %v1112_v19 = vadd.f32 %v1110_v25, %v1107_v47 }
 0x13e   :  { %v581_v4 = vmul.f32 %v3443_v32, %v2457_v51  ;;  %v3444_v17 = vstv %s2045_s12  ;;  %v3445_v14 = vmov %v3430_v44  ;;  %v1025_v48 = vadd.f32 %v1023_v55, %v1020_v41  ;;  %s2905_s12 = sld [smem:[#allocation4 + $0x50]] }
 0x13f   :  { %v1135_v29 = vmul.f32 %v3444_v17, %v2604_v27  ;;  %v907_v59 = vadd.f32 %v905_v46, %v760_v31  ;;  %v910_v35 = vmul.f32 %v3445_v14, %v2502_v12  ;;  %v3447_v13 = vcombine.high %v3446_v1, %v3446_v1  ;;  %1204 = vrot.lane.b32.xlu0 %v1112_v19, %s1607_s7  ;;  %v3459_v31 = vld [vmem:[#allocation103_spill] sm:$0xff] }
 0x140   :  { %v583_v44 = vadd.f32 %v581_v4, %v476_v30  ;;  %v377_v49 = vadd.f32 %v3448_v52, %v2692_v3  ;;  %v3449_v6 = vmov %v3436_v54  ;;  %v3450_v45 = vmov %v3437_v23  ;;  %v3455_v54 = vld [vmem:[#allocation113_spill] sm:$0xff]  ;;  %v3462_v30 = vld [vmem:[#allocation88_spill] sm:$0xff] }
 0x141   :  { %v778_v2 = vadd.f32 %v3447_v13, %v589_v24  ;;  %v912_v25 = vadd.f32 %v910_v35, %v907_v59  ;;  %v1017_v10 = vmul.f32 %v3449_v6, %v2537_v60  ;;  %v1022_v9 = vmul.f32 %v3450_v45, %v2571_v34  ;;  %v3467_v13 = vld [vmem:[#allocation112_spill] sm:$0xff] }
 0x142   :  { %v3451_v16 = vstv %s2038_s10  ;;  %v1132_v5 = vadd.f32 %v1130_v0, %v1025_v48  ;;  %v3453_v58 = vcombine.high %v3452_v36, %v3452_v36  ;;  %v588_v3 = vadd.f32 %v3454_v56, %v583_v44  ;;  %v3469_v6 = vld [vmem:[#allocation104_spill] sm:$0xff]  ;;  %s3499_s10 = sld [smem:[#allocation77_spill]] }
 0x143   :  { %v918_v62 = vmul.f32 %v3451_v16, %v2519_v33  ;;  %v484_v42 = vadd.f32 %v3455_v54, %v377_v49  ;;  %v1019_v11 = vadd.f32 %v1017_v10, %v912_v25  ;;  %v3456_v18 = vmov %v3439_v53 }
 0x144   :  { %v793_v8 = vadd.f32 %v3453_v58, %v778_v2  ;;  %v1129_v23 = vmul.f32 %v3456_v18, %v2617_v61  ;;  %v3457_v55 = vstv %s2029_s28  ;;  %v3458_v21 = vstv %s2048_s29  ;;  %s3478_s28 = sld [smem:[#allocation72_spill]]  ;;  %s3482_s29 = sld [smem:[#allocation44_spill]] }
 0x145   :  { %v923_v40 = vmul.f32 %v3457_v55, %v2505_v7  ;;  %v594_v15 = vmul.f32 %v3458_v21, %v2460_v57  ;;  %v1137_v47 = vadd.f32 %v1135_v29, %v1132_v5  ;;  %v777_v0 = vadd.f32 %v3446_v1, %v588_v3 }
 0x146   :  { %v920_v53 = vadd.f32 %v918_v62, %v793_v8  ;;  %v489_v38 = vadd.f32 %v3459_v31, %v484_v42  ;;  %v1024_v46 = vadd.f32 %v1022_v9, %v1019_v11  ;;  %v3460_v41 = vmov %v3444_v17  ;;  %v3471_v62 = vld [vmem:[#allocation105_spill] sm:$0xff]  ;;  %v3474_v42 = vld [vmem:[#allocation79_spill] sm:$0xff] }
 0x147   :  { %v1134_v28 = vmul.f32 %v3460_v41, %v2620_v50  ;;  %v3461_v24 = vstv %s2056_s4  ;;  %v376_v32 = vadd.f32 %v3462_v30, %v2677_v37  ;;  %1230 = vrot.lane.b32.xlu1 %v1137_v47, %s1608_s21  ;;  %v792_v19 = vadd.f32 %v3452_v36, %v777_v0  ;;  %v3483_v41 = vld [vmem:[#allocation80_spill] sm:$0xff]  ;;  %s2907_s4 = sld [smem:[#allocation4 + $0x26]] }
 0x148   :  { %v1030_v63 = vmul.f32 %v3461_v24, %v2540_v43  ;;  %v925_v4 = vadd.f32 %v923_v40, %v920_v53  ;;  %v3463_v17 = vmov %v3451_v16  ;;  %v596_v59 = vadd.f32 %v594_v15, %v489_v38  ;;  %v3480_v53 = vld [vmem:[#allocation84_spill] sm:$0xff] }
 0x149   :  { %v917_v29 = vmul.f32 %v3463_v17, %v2516_v39  ;;  %v1131_v14 = vadd.f32 %v1129_v23, %v1024_v46  ;;  %v3464_v35 = vstv %s2065_s11  ;;  %v3466_v1 = vstv %s2077_s6  ;;  %v3476_v23 = vld [vmem:[#allocation93_spill] sm:$0xff]  ;;  %s3510_s11 = sld [smem:[#allocation78_spill]]  ;;  %s2953_s6 = sld [smem:[#allocation4 + $0x5e]] }
 0x14a   :  { %v1035_v48 = vmul.f32 %v3464_v35, %v2574_v20  ;;  %v1142_v37 = vmul.f32 %v3466_v1, %v2601_v26  ;;  %v483_v2 = vadd.f32 %v3467_v13, %v376_v32  ;;  %v1032_v44 = vadd.f32 %v1030_v63, %v925_v4  ;;  %v3486_v32 = vld [vmem:[#allocation94_spill] sm:$0xff] }
 0x14b   :  { %v919_v52 = vadd.f32 %v917_v29, %v792_v19  ;;  %v3468_v49 = vmov %v3457_v55  ;;  %v601_v10 = vadd.f32 %v3469_v6, %v596_v59  ;;  %v1136_v45 = vadd.f32 %v1134_v28, %v1131_v14  ;;  %v3494_v6 = vld [vmem:[#allocation107_spill] sm:$0xff] }
 0x14c   :  { %v922_v25 = vmul.f32 %v3468_v49, %v2502_v12  ;;  %v3470_v9 = vstv %s2088_s27  ;;  %v488_v5 = vadd.f32 %v3471_v62, %v483_v2  ;;  %v3472_v36 = vmov %v3458_v21  ;;  %s1609_s27 = smov 126  }
 0x14d   :  { %v1147_v16 = vmul.f32 %v3470_v9, %v2604_v27  ;;  %v593_v58 = vmul.f32 %v3472_v36, %v2457_v51  ;;  %v1037_v8 = vadd.f32 %v1035_v48, %v1032_v44  ;;  %v3473_v3 = vmov %v3461_v24  ;;  %1228 = vrot.lane.b32.xlu0 %v1136_v45, %s1608_s21  ;;  %v3495_v45 = vld [vmem:[#allocation108_spill] sm:$0xff] }
 0x14e   :  { %v924_v56 = vadd.f32 %v922_v25, %v919_v52  ;;  %v1029_v54 = vmul.f32 %v3473_v3, %v2537_v60  ;;  %v3475_v11 = vcombine.high %v3474_v42, %v3474_v42  ;;  %v3477_v55 = vstv %s3465_s24 }
 0x14f   :  { %v445_v40 = vmul.f32 %v3477_v55, %v3476_v23  ;;  %v3479_v21 = vmov %v3464_v35  ;;  %v595_v47 = vadd.f32 %v593_v58, %v488_v5  ;;  %v3481_v0 = vstv %s2059_s16  ;;  %v3490_v35 = vld [vmem:[#allocation106_spill] sm:$0xff]  ;;  %s2944_s16 = sld [smem:[#allocation4 + $0x57]] }
 0x150   :  { %v810_v18 = vadd.f32 %v3475_v11, %v601_v10  ;;  %v1034_v15 = vmul.f32 %v3479_v21, %v2571_v34  ;;  %v562_v31 = vmul.f32 %v3481_v0, %v3480_v53  ;;  %v1144_v38 = vadd.f32 %v1142_v37, %v1037_v8  ;;  %v3502_v11 = vld [vmem:[#allocation91_spill] sm:$0xff]  ;;  %v3504_v21 = vld [vmem:[#allocation85_spill] sm:$0xff] }
 0x151   :  { %v1031_v46 = vadd.f32 %v1029_v54, %v924_v56  ;;  %v3484_v28 = vcombine.high %v3483_v41, %v3483_v41  ;;  %v3485_v63 = vstv %s2080_s5  ;;  %v3487_v4 = vmov %v3477_v55  ;;  %v3501_v54 = vld [vmem:[#allocation90_spill] sm:$0xff]  ;;  %s2946_s5 = sld [smem:[#allocation4 + $0x2d]] }
 0x152   :  { %v930_v30 = vmul.f32 %v3485_v63, %v2519_v33  ;;  %v446_v19 = vmul.f32 %v3487_v4, %v3486_v32  ;;  %v3488_v17 = vmov %v3466_v1  ;;  %v3489_v59 = vmov %v3470_v9  ;;  %v3509_v4 = vld [vmem:[#allocation82_spill] sm:$0xff] }
 0x153   :  { %v825_v24 = vadd.f32 %v3484_v28, %v810_v18  ;;  %v1141_v29 = vmul.f32 %v3488_v17, %v2617_v61  ;;  %v1146_v14 = vmul.f32 %v3489_v59, %v2620_v50  ;;  %v600_v48 = vadd.f32 %v3490_v35, %v595_v47 }
 0x154   :  { %v1149_v1 = vadd.f32 %v1147_v16, %v1144_v38  ;;  %v1036_v37 = vadd.f32 %v1034_v15, %v1031_v46  ;;  %v3492_v2 = vstv %s3478_s28  ;;  %v3493_v52 = vstv %s3482_s29 }
 0x155   :  { %v932_v13 = vadd.f32 %v930_v30, %v825_v24  ;;  %v935_v44 = vmul.f32 %v3492_v2, %v2505_v7  ;;  %v557_v49 = vmul.f32 %v3493_v52, %v2457_v51  ;;  %v809_v25 = vadd.f32 %v3474_v42, %v600_v48 }
 0x156   :  { %v447_v10 = vadd.f32 %v445_v40, %v3494_v6  ;;  %v448_v9 = vadd.f32 %v446_v19, %v3495_v45  ;;  %v3496_v16 = vmov %v3493_v52  ;;  %1252 = vrot.lane.b32.xlu1 %v1149_v1, %s1609_s27  ;;  %v1143_v5 = vadd.f32 %v1141_v29, %v1036_v37  ;;  %v3513_v52 = vld [vmem:[#allocation81_spill] sm:$0xff] }
 0x157   :  { %v558_v62 = vmul.f32 %v3496_v16, %v2460_v57  ;;  %v937_v36 = vadd.f32 %v935_v44, %v932_v13  ;;  %v3497_v58 = vstv %s3491_s8  ;;  %v824_v8 = vadd.f32 %v3483_v41, %v809_v25 }
 0x158   :  { %v1042_v51 = vmul.f32 %v3497_v58, %v2540_v43  ;;  %v3500_v56 = vmov %v3485_v63  ;;  %v452_v42 = vadd.f32 %v3501_v54, %v447_v10  ;;  %v453_v18 = vadd.f32 %v3502_v11, %v448_v9 }
 0x159   :  { %v929_v3 = vmul.f32 %v3500_v56, %v2516_v39  ;;  %v1148_v23 = vadd.f32 %v1146_v14, %v1143_v5  ;;  %v3503_v55 = vstv %s2099_s22  ;;  %v3505_v15 = vmov %v3481_v0  ;;  %s1610_s22 = smov 125  }
 0x15a   :  { %v1044_v57 = vadd.f32 %v1042_v51, %v937_v36  ;;  %v1047_v40 = vmul.f32 %v3503_v55, %v2574_v20  ;;  %v563_v47 = vmul.f32 %v3505_v15, %v3504_v21  ;;  %v3506_v0 = vmov %v3492_v2 }
 0x15b   :  { %v931_v53 = vadd.f32 %v929_v3, %v824_v8  ;;  %v934_v38 = vmul.f32 %v3506_v0, %v2502_v12  ;;  %v559_v46 = vadd.f32 %v557_v49, %v452_v42  ;;  %v560_v41 = vadd.f32 %v558_v62, %v453_v18  ;;  %1250 = vrot.lane.b32.xlu0 %v1148_v23, %s1609_s27 }
 0x15c   :  { %v1049_v28 = vadd.f32 %v1047_v40, %v1044_v57  ;;  %v3507_v24 = vstv %s3498_s25  ;;  %v3508_v30 = vstv %s3499_s10  ;;  %v725_v19 = vcombine.high %v3509_v4, %v3509_v4 }
 0x15d   :  { %v1154_v63 = vmul.f32 %v3507_v24, %v2601_v26  ;;  %v1159_v32 = vmul.f32 %v3508_v30, %v2604_v27  ;;  %v936_v17 = vadd.f32 %v934_v38, %v931_v53  ;;  %v3511_v29 = vmov %v3497_v58 }
 0x15e   :  { %v1041_v59 = vmul.f32 %v3511_v29, %v2537_v60  ;;  %v564_v14 = vadd.f32 %v562_v31, %v559_v46  ;;  %v565_v35 = vadd.f32 %v563_v47, %v560_v41  ;;  %v897_v1 = vstv %s2905_s12  ;;  %v235_v29 = vld [vmem:[#allocation9 + $0x2] ss:$8 sm:$0x3] }
 0x15f   :  { %v1156_v48 = vadd.f32 %v1154_v63, %v1049_v28  ;;  %v1004_v37 = vstv %s2907_s4  ;;  %v3512_v2 = vmov %v3503_v55  ;;  %v3514_v25 = vcombine.high %v3513_v52, %v3513_v52 }
 0x160   :  { %v1043_v13 = vadd.f32 %v1041_v59, %v936_v17  ;;  %v1046_v44 = vmul.f32 %v3512_v2, %v2571_v34  ;;  %v713_v49 = vadd.f32 %v3513_v52, %v564_v14  ;;  %v3515_v31 = vmov %v3507_v24  ;;  %v233_v17 = vld [vmem:[#allocation9 + $0x1] ss:$8 sm:$0x3] }
 0x161   :  { %v714_v6 = vadd.f32 %v3514_v25, %v565_v35  ;;  %v1161_v10 = vadd.f32 %v1159_v32, %v1156_v48  ;;  %v1153_v45 = vmul.f32 %v3515_v31, %v2617_v61  ;;  %v3516_v9 = vmov %v3508_v30 }
 0x162   :  { %v1158_v16 = vmul.f32 %v3516_v9, %v2620_v50  ;;  %v3517_v62 = vstv %s3510_s11  ;;  %v1048_v36 = vadd.f32 %v1046_v44, %v1043_v13  ;;  %v728_v58 = vadd.f32 %v3509_v4, %v713_v49 }
 0x163   :  { %v893_v5 = vmul.f32 %v3517_v62, %v2516_v39  ;;  %v729_v51 = vadd.f32 %v725_v19, %v714_v6  ;;  %v3518_v8 = vmov %v3517_v62  ;;  %1274 = vrot.lane.b32.xlu1 %v1161_v10, %s1610_s22  ;;  %v898_v3 = vmul.f32 %v897_v1, %v2502_v12 }
 0x164   :  { %v894_v56 = vmul.f32 %v3518_v8, %v2519_v33  ;;  %v1155_v54 = vadd.f32 %v1153_v45, %v1048_v36  ;;  %v899_v18 = vmul.f32 %v897_v1, %v2505_v7  ;;  %v1005_v23 = vmul.f32 %v1004_v37, %v2537_v60  ;;  %v237_v36 = vld [vmem:[#allocation9 + $0x4] ss:$8 sm:$0x3] }
 0x165   :  { %v895_v42 = vadd.f32 %v893_v5, %v728_v58  ;;  %v1009_v39 = vstv %s2944_s16  ;;  %v1116_v57 = vstv %s2946_s5  ;;  %v1006_v15 = vmul.f32 %v1004_v37, %v2540_v43 }
 0x166   :  { %v896_v11 = vadd.f32 %v894_v56, %v729_v51  ;;  %v1160_v55 = vadd.f32 %v1158_v16, %v1155_v54  ;;  %v1121_v47 = vstv %s2953_s6  ;;  %v1010_v12 = vmul.f32 %v1009_v39, %v2571_v34  ;;  %v239_v56 = vld [vmem:[#allocation9 + $0x5] ss:$8 sm:$0x3] }
 0x167   :  { %v900_v40 = vadd.f32 %v898_v3, %v895_v42  ;;  %v1011_v0 = vmul.f32 %v1009_v39, %v2574_v20  ;;  %v1117_v38 = vmul.f32 %v1116_v57, %v2617_v61  ;;  %v1118_v7 = vmul.f32 %v1116_v57, %v2601_v26  ;;  %v231_v26 = vld [vmem:[#allocation9] ss:$8 sm:$0x3] }
 0x168   :  { %v901_v21 = vadd.f32 %v899_v18, %v896_v11  ;;  %1272 = vrot.lane.b32.xlu0 %v1160_v55, %s1610_s22  ;;  %v1122_v41 = vmul.f32 %v1121_v47, %v2620_v50  ;;  %v1123_v28 = vmul.f32 %v1121_v47, %v2604_v27  ;;  %v3519_v50 = vld [vmem:[#allocation40_spill] sm:$0xff]  ;;  %v3520_v27 = vld [vmem:[#allocation41_spill] sm:$0xff] }
 0x169   :  { %v1007_v33 = vadd.f32 %v1005_v23, %v900_v40  ;;  %v1193_v59 = vrot.slane %v233_v17, %v3519_v50  ;;  %v1197_v14 = vrot.slane %v233_v17, %v3520_v27  ;;  %v1173_v1 = vrot.slane %v231_v26, %v3519_v50 }
 0x16a   :  { %v1008_v53 = vadd.f32 %v1006_v15, %v901_v21  ;;  %v1177_v37 = vrot.slane %v231_v26, %v3520_v27  ;;  %v1215_v13 = vrot.slane %v235_v29, %v3519_v50  ;;  %v1219_v2 = vrot.slane %v235_v29, %v3520_v27  ;;  %v241_v15 = vld [vmem:[#allocation9 + $0x6] ss:$8 sm:$0x3] }
 0x16b   :  { %v1012_v60 = vadd.f32 %v1010_v12, %v1007_v33  ;;  %v1239_v8 = vrot.slane %v237_v36, %v3519_v50  ;;  %v1243_v42 = vrot.slane %v237_v36, %v3520_v27  ;;  %v1261_v57 = vrot.slane %v239_v56, %v3519_v50 }
 0x16c   :  { %v1013_v46 = vadd.f32 %v1011_v0, %v1008_v53  ;;  %v1265_v55 = vrot.slane %v239_v56, %v3520_v27 }
 0x16d   :  { %v1119_v24 = vadd.f32 %v1117_v38, %v1012_v60  ;;  %v1283_v60 = vrot.slane %v241_v15, %v3519_v50 }
 0x16e   :  { %v1120_v43 = vadd.f32 %v1118_v7, %v1013_v46  ;;  %v1287_v46 = vrot.slane %v241_v15, %v3520_v27 }
 0x16f   :  { %v1124_v63 = vadd.f32 %v1122_v41, %v1119_v24 }
 0x170   :  { %v1125_v30 = vadd.f32 %v1123_v28, %v1120_v43 }
 0x191   :  { %v1165_v32 = vpop.permute.xlu1 %1164 }
 0x193   :  { %v1163_v4 = vpop.permute.xlu0 %1162 }
 0x194   :  { %v1167_v44 = vsel %vm1166_vm9, %v1163_v4, %v1165_v32  ;;  %v1168_v52 = vsel %vm1166_vm9, %v1165_v32, %v1163_v4 }
 0x195   :  { %v1180_v9 = vmul.f32 %v1173_v1, %v1168_v52  ;;  %v1181_v16 = vmul.f32 %v1177_v37, %v1167_v44 }
 0x19a   :  { %v1185_v19 = vpop.permute.xlu1 %1184 }
 0x1a2   :  { %v1183_v34 = vpop.permute.xlu0 %1182 }
 0x1a3   :  { %v1187_v35 = vsel %vm1186_vm8, %v1183_v34, %v1185_v19  ;;  %v1188_v48 = vsel %vm1186_vm8, %v1185_v19, %v1183_v34 }
 0x1a4   :  { %v1200_v6 = vmul.f32 %v1193_v59, %v1188_v48  ;;  %v1201_v10 = vmul.f32 %v1197_v14, %v1187_v35  ;;  %v3521_v35 = vld [vmem:[#allocation17_spill] sm:$0xff] }
 0x1a6   :  { %v1202_v58 = vadd.f32 %v1200_v6, %v1180_v9  ;;  %v1203_v51 = vadd.f32 %v1201_v10, %v1181_v16 }
 0x1ac   :  { %v1207_v20 = vpop.permute.xlu1 %1206 }
 0x1b1   :  { %v1205_v61 = vpop.permute.xlu0 %1204 }
 0x1b2   :  { %v1209_v49 = vsel %vm1208_vm10, %v1205_v61, %v1207_v20  ;;  %v1210_v25 = vsel %vm1208_vm10, %v1207_v20, %v1205_v61 }
 0x1b3   :  { %v1222_v62 = vmul.f32 %v1215_v13, %v1210_v25  ;;  %v1223_v5 = vmul.f32 %v1219_v2, %v1209_v49 }
 0x1b5   :  { %v1224_v3 = vadd.f32 %v1222_v62, %v1202_v58  ;;  %v1225_v54 = vadd.f32 %v1223_v5, %v1203_v51 }
 0x1b7   :  { %v1226_v47 = vadd.f32 %v1224_v3, %v1124_v63  ;;  %v1227_v33 = vadd.f32 %v1225_v54, %v1125_v30 }
 0x1b9   :  { %v1231_v31 = vpop.permute.xlu1 %1230 }
 0x1bf   :  { %v1229_v45 = vpop.permute.xlu0 %1228 }
 0x1c0   :  { %v1233_v23 = vsel %vm1232_vm11, %v1229_v45, %v1231_v31  ;;  %v1234_v39 = vsel %vm1232_vm11, %v1231_v31, %v1229_v45 }
 0x1c1   :  { %v1246_v53 = vmul.f32 %v1239_v8, %v1233_v23  ;;  %v1247_v12 = vmul.f32 %v1243_v42, %v1234_v39 }
 0x1c3   :  { %v1248_v41 = vadd.f32 %v1246_v53, %v1226_v47  ;;  %v1249_v28 = vadd.f32 %v1247_v12, %v1227_v33 }
 0x1c8   :  { %v1253_v11 = vpop.permute.xlu1 %1252 }
 0x1cd   :  { %v1251_v18 = vpop.permute.xlu0 %1250 }
 0x1ce   :  { %v1255_v40 = vsel %vm1254_vm12, %v1251_v18, %v1253_v11  ;;  %v1256_v21 = vsel %vm1254_vm12, %v1253_v11, %v1251_v18 }
 0x1cf   :  { %v1268_v0 = vmul.f32 %v1261_v57, %v1255_v40  ;;  %v1269_v38 = vmul.f32 %v1265_v55, %v1256_v21 }
 0x1d1   :  { %v1270_v4 = vadd.f32 %v1268_v0, %v1248_v41  ;;  %v1271_v19 = vadd.f32 %v1269_v38, %v1249_v28 }
 0x1d5   :  { %v1275_v7 = vpop.permute.xlu1 %1274 }
 0x1da   :  { %v1273_v24 = vpop.permute.xlu0 %1272 }
 0x1db   :  { %v1277_v43 = vsel %vm1276_vm13, %v1273_v24, %v1275_v7  ;;  %v1278_v32 = vsel %vm1276_vm13, %v1275_v7, %v1273_v24 }
 0x1dc   :  { %v1290_v63 = vmul.f32 %v1283_v60, %v1277_v43  ;;  %v1291_v30 = vmul.f32 %v1287_v46, %v1278_v32 }
 0x1de   :  { %v1292_v34 = vadd.f32 %v1290_v63, %v1270_v4  ;;  %v1293_v17 = vadd.f32 %v1291_v30, %v1271_v19 }
 0x1e0   :  { %v1452_v20 = vmul.f32 -1.442695, %v1292_v34  ;;  %v1453_v22 = vmul.f32 -1.442695, %v1293_v17 }
 0x1e2   :  { %1477 = vpow2.f32 %v1452_v20 }
 0x1e3   :  { %1479 = vpow2.f32 %v1453_v22 }
 0x1ec   :  { %v1478_v61 = vpop.eup %1477 }
 0x1ed   :  { %v1480_v26 = vpop.eup %1479  ;;  %v1300_v29 = vadd.f32 1.0, %v1478_v61 }
 0x1ee   :  { %v1301_v50 = vadd.f32 1.0, %v1480_v26 }
 0x1ef   :  { %1481 = vrcp.f32 %v1300_v29 }
 0x1f0   :  { %1483 = vrcp.f32 %v1301_v50 }
 0x1f9   :  { %v1482_v59 = vpop.eup %1481 }
 0x1fa   :  { %v1484_v27 = vpop.eup %1483 }
 0x1fb   :  { %v1308_v14 = vcombine.low %v1482_v59, %v1484_v27 }
 0x1fd   :  { %v1315_v48 = vrot.slane %v1308_v14, %v3521_v35 }
 0x1ff   :  { %v1322_v1 = vrot.slane %v1315_v48, %v3521_v35  ;;  %v1325_v37 = vcombine.high %v1315_v48, %v1315_v48 }
 0x201   :  { %1324 = vst.msk [vmem:[#allocation12] sm:$0x3] %vm1700_vm1, %v1322_v1  ;;  %v1332_v2 = vrot.slane %v1325_v37, %v3521_v35 }
 0x203   :  { %1335 = vst.msk [vmem:[#allocation12 + $0x2] sm:$0x3] %vm1700_vm1, %v1332_v2 }
 0x204   :  { %1572 = shalt.err (!%p1569_p3)
}
 0x205   :  { %s3523_s30 = sld [smem:[#allocation117_spill]] }
 0x20b   :  { %s1573_s3 = scalar_lea.hbm %s3523_s30, 64 }
 0x20c   :  { %p1574_p4 = scmp.ne.s32.totalorder %s3523_s30, %s1573_s3  ;;  %p1577_p5 = scmp.lt.u32.totalorder %s1573_s3, %s3523_s30 }
 0x20e   :  { %p1579_p6 = pnand %p1577_p5, %p1574_p4 }
 0x210   :  { %1582 = shalt.err (!%p1579_p6)
}
 0x211   :  { %s3524_s18 = smov 32  }
 0x212   :  { %1347 = dma.vmem_to_hbm [thread:$0]  %s1342_s1, 64, %s3523_s30, [#allocation6], %s3524_s18, %s3524_s18, %s1606_s26  }
 0x213   :  { %1589 = dma.done.wait [#allocation6], 64  }
 0x214   :  { %1590 = vsyncadd [#allocation6], 4294967232 }
 0x215   :  { %1351 = vsyncpa [#allocation5], 1 }
 0x216   :  { %1352 = vsyncpa [#allocation10], 1 }
 0x217   :  { %1353 = vsyncpa [#allocation6], 1 }
 0x218   :  { %1354 = vsyncpa [#allocation7], 1 }

</bundles_post_ra>
